<compile_context>
chip_gen: v7x
topology: tpu7x:2x2x1
jax: 0.10.0
libtpu: 0.0.40
codegen_flags: <defaults>
</compile_context>

<pallas_src>
from functools import partial

import numpy as np
import jax
import jax.numpy as jnp
from jax import lax
from jax.experimental import pallas as pl
from jax.experimental.pallas import tpu as pltpu

LANE = 128   # TPU lane width; Cout / num_classes are padded up to this.


# ---------------------------------------------------------------- kernel ----

def _fused_det_kernel(x_ref, w_ref, mask_ref, cb_ref, hw_ref, hb_ref,
                      feat_ref, logit_ref, *, Bt, CH, n_chunks, Wp):
    """Fused conv3x3 + bias + ReLU + masked global-avg-pool + linear head.

    x_ref    : (Bt, Q_pad, Cin) bf16  zero-padded flattened frames.
    w_ref    : (9, Cin, LANE)   bf16  conv weight per 3x3 tap (Cout padded).
    mask_ref : (L_pad, 1)       f32   valid-pixel mask * 1/(H*W).
    cb_ref   : (1, LANE)        f32   conv bias (padded).
    hw_ref   : (LANE, LANE)     f32   head weight (Cout x NC, padded).
    hb_ref   : (1, LANE)        f32   head bias (padded).
    feat_ref : (Bt, 1, LANE)    f32   pooled features out.
    logit_ref: (Bt, 1, LANE)    f32   logits out.

    Conv output rows are processed in `n_chunks` chunks of `CH` rows per
    image so the f32 accumulator lives entirely in vector registers and
    never round-trips VMEM.
    """
    # Hoist broadcasts out of the unrolled loops (JAX does not CSE them).
    cbias = jnp.broadcast_to(cb_ref[...], (CH, LANE))             # (CH, LANE)
    shifts = tuple(dh * Wp + dw for dh in range(3) for dw in range(3))

    for b in range(Bt):                                           # static
        feat = jnp.zeros((1, LANE), jnp.float32)
        for c in range(n_chunks):                                 # static
            base = c * CH
            acc = None
            for t, s in enumerate(shifts):                        # 3x3 taps
                # Shifted bf16 LHS read straight from the input block; tap
                # results accumulate in registers (no scratch, no f32
                # projection store/load).
                lhs = x_ref[b, pl.ds(base + s, CH), :]            # (CH, Cin)
                p = jnp.dot(lhs, w_ref[t],
                            preferred_element_type=jnp.float32)   # (CH, LANE)
                acc = p if acc is None else acc + p
            act = jnp.maximum(acc + cbias, 0.0)                   # f32 VPU
            # mask folds the 1/(H*W) scale and zeroes border/padded rows, so
            # pooling is one fused multiply + cross-sublane reduce (XLU).
            mask_c = mask_ref[pl.ds(base, CH), :]                 # (CH, 1)
            feat = feat + jnp.sum(act * mask_c, axis=0, keepdims=True)
        # Linear head on the pooled feature (tiny f32 matmul).
        logits = jnp.dot(feat, hw_ref[...],
                         preferred_element_type=jnp.float32) + hb_ref[...]
        feat_ref[b] = feat.astype(feat_ref.dtype)
        logit_ref[b] = logits.astype(logit_ref.dtype)


# --------------------------------------------------------------- helpers ----

def _pick_batch_tile(n):
    """Largest batch tile that keeps the grid >= 2 (megacore still splits)."""
    for bt in (8, 4, 2):
        if n % bt == 0 and n // bt >= 2:
            return bt
    return 1


def _pool_mask(H, W, L_pad):
    """(L_pad, 1) f32: 1/(H*W) where the flattened conv-output row is a real
    output pixel, 0 on the zero-padding border and in the row padding."""
    Wp = W + 2
    L = H * Wp - 2
    r = np.arange(L_pad)
    q = r + (Wp + 1)
    valid = ((r < L) & (q // Wp >= 1) & (q // Wp <= H)
             & (q % Wp >= 1) & (q % Wp <= W))
    return jnp.asarray((valid.astype(np.float32) / float(H * W))
                       .reshape(L_pad, 1))


def _fused_forward(x_flat, w_taps, mask, conv_b, head_w, head_b, *,
                   Bt, CH, Wp, cout, nc):
    N, Q_pad, Cin = x_flat.shape
    L_pad = mask.shape[0]
    n_chunks = L_pad // CH

    flops = N * (2 * 9 * L_pad * Cin * cout + 2 * cout * nc)
    bytes_accessed = (x_flat.size * 2 + w_taps.size * 2 + mask.size * 4
                      + (conv_b.size + head_w.size + head_b.size) * 4
                      + 2 * N * LANE * 4)

    kernel = partial(_fused_det_kernel, Bt=Bt, CH=CH, n_chunks=n_chunks, Wp=Wp)
    return pl.pallas_call(
        kernel,
        out_shape=(jax.ShapeDtypeStruct((N, 1, LANE), jnp.float32),
                   jax.ShapeDtypeStruct((N, 1, LANE), jnp.float32)),
        grid=(N // Bt,),
        in_specs=[
            pl.BlockSpec((Bt, Q_pad, Cin), lambda n: (n, 0, 0)),   # frames
            pl.BlockSpec((9, Cin, LANE), lambda n: (0, 0, 0)),     # conv taps
            pl.BlockSpec((L_pad, 1), lambda n: (0, 0)),            # pool mask
            pl.BlockSpec((1, LANE), lambda n: (0, 0)),             # conv bias
            pl.BlockSpec((LANE, LANE), lambda n: (0, 0)),          # head weight
            pl.BlockSpec((1, LANE), lambda n: (0, 0)),             # head bias
        ],
        out_specs=(
            pl.BlockSpec((Bt, 1, LANE), lambda n: (n, 0, 0)),      # features
            pl.BlockSpec((Bt, 1, LANE), lambda n: (n, 0, 0)),      # logits
        ),
        compiler_params=pltpu.CompilerParams(
            dimension_semantics=("parallel",),                     # batch -> TCs
            vmem_limit_bytes=32 * 1024 * 1024),                    # v7x-safe
        cost_estimate=pl.CostEstimate(flops=flops, transcendentals=0,
                                      bytes_accessed=bytes_accessed),
    )(x_flat, w_taps, mask, conv_b, head_w, head_b)


@partial(jax.jit, static_argnames=("cout", "nc"))
def det_forward(x_nchw, w_taps, conv_b, head_w, head_b, *, cout, nc):
    """conv3x3+ReLU -> global avg pool -> linear, fully fused on TPU."""
    N, Cin, H, W = x_nchw.shape
    Hp, Wp = H + 2, W + 2
    Q = Hp * Wp
    L = H * Wp - 2                       # number of conv-output rows
    n_chunks = -(-L // 128)              # register-sized row chunks
    CH = 8 * (-(-L // (8 * n_chunks)))   # chunk height, multiple of 8
    L_pad = CH * n_chunks
    Q_pad = L_pad + 2 * (Wp + 1)

    # TODO(synk): fold this transpose/pad prep into the kernel path (accept
    # NHWC and mask border taps in-kernel) to save HBM passes at real
    # detector resolutions.
    x_nhwc = jnp.transpose(x_nchw, (0, 2, 3, 1))
    x_pad = jnp.pad(x_nhwc, ((0, 0), (1, 1), (1, 1), (0, 0)))
    x_flat = x_pad.reshape(N, Q, Cin)
    if Q_pad > Q:
        x_flat = jnp.pad(x_flat, ((0, 0), (0, Q_pad - Q), (0, 0)))
    x_flat = x_flat.astype(jnp.bfloat16)

    mask = _pool_mask(H, W, L_pad)
    Bt = _pick_batch_tile(N)
    # TODO(synk): for large H*W, add a spatial grid axis (haloed row-tiles)
    # sized from pltpu.get_tpu_info().vmem_capacity_bytes (64 MiB on v7x).
    feat_p, logit_p = _fused_forward(x_flat, w_taps, mask, conv_b, head_w,
                                     head_b, Bt=Bt, CH=CH, Wp=Wp,
                                     cout=cout, nc=nc)
    return feat_p[:, 0, :cout], logit_p[:, 0, :nc]


# ----------------------------------------------------------- sub-modules ----

class SimpleDetModule:
    """Stand-in for modelTeacher / s_f / s_w: conv->relu->pool->linear."""

    def __init__(self, seed, cin=4, cout=8, num_classes=16):
        key = jax.random.PRNGKey(seed)
        k1, k2, k3, k4 = jax.random.split(key, 4)
        conv_w = 0.1 * jax.random.normal(k1, (cout, cin, 3, 3), jnp.float32)
        conv_b = 0.1 * jax.random.normal(k2, (cout,), jnp.float32)
        head_w = 0.1 * jax.random.normal(k3, (num_classes, cout), jnp.float32)
        head_b = 0.1 * jax.random.normal(k4, (num_classes,), jnp.float32)
        self.cout = cout
        self.num_classes = num_classes
        self.raw_params = (conv_w, conv_b, head_w, head_b)

        # Pack once into the lane-dense kernel layout (init-time, not per call).
        # conv weight [Cout,Cin,3,3] -> [kh,kw,Cin,Cout] -> (9, Cin, Cout),
        # Cout padded to 128 lanes, bf16 MXU operand.
        w_taps = jnp.transpose(conv_w, (2, 3, 1, 0)).reshape(9, cin, cout)
        self.w_taps = (jnp.zeros((9, cin, LANE), jnp.bfloat16)
                       .at[:, :, :cout].set(w_taps.astype(jnp.bfloat16)))
        self.conv_b = jnp.zeros((1, LANE), jnp.float32).at[0, :cout].set(conv_b)
        # PyTorch Linear weight is [NC, Cout]; kernel wants (Cout, NC) padded.
        self.head_w = (jnp.zeros((LANE, LANE), jnp.float32)
                       .at[:cout, :num_classes].set(head_w.T))
        self.head_b = (jnp.zeros((1, LANE), jnp.float32)
                       .at[0, :num_classes].set(head_b))

    def __call__(self, x_nchw, branch="supervised"):
        feat, logits = det_forward(x_nchw, self.w_taps, self.conv_b,
                                   self.head_w, self.head_b,
                                   cout=self.cout, nc=self.num_classes)
        if branch == "feature":
            return feat
        return logits


# --------------------------------------------------------------- DG_model ---

class DG_model:
    """JAX/Pallas port of adapteacher DG_model: pure dispatch over 3 models."""

    def __init__(self, modelTeacher, s_f, s_w):
        # (DataParallel/DistributedDataParallel unwrapping has no JAX analogue.)
        self.modelTeacher = modelTeacher
        self.s_f = s_f
        self.s_w = s_w

    def forward(self, model_type, branch, *args):
        # NOTE: the PyTorch original passes the raw `args` tuple through; here
        # it is unpacked so the submodule receives the image tensor directly.
        if model_type == "teacher":
            return self.modelTeacher(*args, branch=branch)
        elif model_type == "s_f":
            return self.s_f(*args, branch=branch)
        elif model_type == "s_w":
            return self.s_w(*args, branch=branch)
        # Original returns None implicitly for unknown model_type.
        return None

    __call__ = forward


# ----------------------------------------------------------------- ref ------

def _ref_forward(x_nchw, conv_w, conv_b, head_w, head_b):
    """Pure-JAX f32 reference of one submodule forward (for sanity check)."""
    y = lax.conv_general_dilated(x_nchw, conv_w, window_strides=(1, 1),
                                 padding="SAME",
                                 dimension_numbers=("NCHW", "OIHW", "NCHW"))
    y = jnp.maximum(y + conv_b[None, :, None, None], 0.0)
    feat = jnp.mean(y, axis=(2, 3))
    logits = feat @ head_w.T + head_b
    return feat, logits


# ------------------------------------------------------------------- main ---

if __name__ == "__main__":
    x = jax.random.normal(jax.random.PRNGKey(0), (2, 4, 16, 16), jnp.float32)

    model = DG_model(
        modelTeacher=SimpleDetModule(seed=1),
        s_f=SimpleDetModule(seed=2),
        s_w=SimpleDetModule(seed=3),
    )

    outs = []
    for mt in ("teacher", "s_f", "s_w"):
        for br in ("supervised", "feature"):
            outs.append(model(mt, br, x))
    for o in outs:
        jax.block_until_ready(o)

    # shape / finiteness sanity
    assert outs[0].shape == (2, 16)   # logits
    assert outs[1].shape == (2, 8)    # pooled features
    assert all(bool(jnp.all(jnp.isfinite(o))) for o in outs)

    # loose numeric check vs pure-JAX f32 reference (bf16 MXU operands)
    ref_feat, ref_logits = _ref_forward(x, *model.modelTeacher.raw_params)
    np.testing.assert_allclose(np.asarray(outs[1]), np.asarray(ref_feat),
                               atol=5e-2, rtol=5e-2)
    np.testing.assert_allclose(np.asarray(outs[0]), np.asarray(ref_logits),
                               atol=5e-2, rtol=5e-2)

    print("KERNEL_OK")
</pallas_src>

<mosaic_0001>
module attributes {stable_mosaic.version = 11 : i64} {
  func.func @_fused_det_kernel(%arg0: i32, %arg1: memref<1x326x4xbf16, #tpu.memory_space<vmem>>, %arg2: memref<9x4x128xbf16, #tpu.memory_space<vmem>>, %arg3: memref<288x1xf32, #tpu.memory_space<vmem>>, %arg4: memref<1x128xf32, #tpu.memory_space<vmem>>, %arg5: memref<128x128xf32, #tpu.memory_space<vmem>>, %arg6: memref<1x128xf32, #tpu.memory_space<vmem>>, %arg7: memref<1x1x128xf32, #tpu.memory_space<vmem>>, %arg8: memref<1x1x128xf32, #tpu.memory_space<vmem>>) attributes {dimension_semantics = [#tpu.dimension_semantics<parallel>], iteration_bounds = array<i64: 2>, scalar_prefetch = 0 : i64, scratch_operands = 0 : i64, tpu.core_type = #tpu.core_type<tc>, window_params = [{transform_indices = @transform_0, window_bounds = array<i64: 1, 326, 4>}, {pipeline_mode = #tpu.pipeline_mode<synchronous>, transform_indices = @transform_1, window_bounds = array<i64: 9, 4, 128>}, {pipeline_mode = #tpu.pipeline_mode<synchronous>, transform_indices = @transform_2, window_bounds = array<i64: 288, 1>}, {pipeline_mode = #tpu.pipeline_mode<synchronous>, transform_indices = @transform_3, window_bounds = array<i64: 1, 128>}, {pipeline_mode = #tpu.pipeline_mode<synchronous>, transform_indices = @transform_4, window_bounds = array<i64: 128, 128>}, {pipeline_mode = #tpu.pipeline_mode<synchronous>, transform_indices = @transform_5, window_bounds = array<i64: 1, 128>}, {transform_indices = @transform_6, window_bounds = array<i64: 1, 1, 128>}, {transform_indices = @transform_7, window_bounds = array<i64: 1, 1, 128>}]} {
    %c0 = arith.constant 0 : index
    %c0_0 = arith.constant 0 : index
    %0 = vector.load %arg4[%c0, %c0_0] : memref<1x128xf32, #tpu.memory_space<vmem>>, vector<1x128xf32>
    %1 = vector.shape_cast %0 : vector<1x128xf32> to vector<1x128xf32>
    %2 = vector.broadcast %1 : vector<1x128xf32> to vector<96x128xf32>
    %cst = arith.constant 0.000000e+00 : f32
    %3 = vector.broadcast %cst : f32 to vector<1x128xf32>
    %c0_1 = arith.constant 0 : index
    %c0_2 = arith.constant 0 : index
    %c0_3 = arith.constant 0 : index
    %4 = vector.load %arg1[%c0_1, %c0_2, %c0_3] : memref<1x326x4xbf16, #tpu.memory_space<vmem>>, vector<1x96x4xbf16>
    %5 = vector.shape_cast %4 : vector<1x96x4xbf16> to vector<96x4xbf16>
    %c0_4 = arith.constant 0 : index
    %c0_5 = arith.constant 0 : index
    %c0_6 = arith.constant 0 : index
    %6 = vector.load %arg2[%c0_4, %c0_5, %c0_6] : memref<9x4x128xbf16, #tpu.memory_space<vmem>>, vector<1x4x128xbf16>
    %7 = vector.shape_cast %6 : vector<1x4x128xbf16> to vector<4x128xbf16>
    %cst_7 = arith.constant dense<0.000000e+00> : vector<96x128xf32>
    %8 = tpu.matmul %5, %7, %cst_7 {dimension_numbers = #tpu.dot_dimension_numbers<[1], [0], [0], [1], [0, 0, 1, 1], [], []>} : vector<96x4xbf16>, vector<4x128xbf16>, vector<96x128xf32> -> vector<96x128xf32>
    %c0_8 = arith.constant 0 : index
    %c1 = arith.constant 1 : index
    %c0_9 = arith.constant 0 : index
    %9 = vector.load %arg1[%c0_8, %c1, %c0_9] : memref<1x326x4xbf16, #tpu.memory_space<vmem>>, vector<1x96x4xbf16>
    %10 = vector.shape_cast %9 : vector<1x96x4xbf16> to vector<96x4xbf16>
    %c1_10 = arith.constant 1 : index
    %c0_11 = arith.constant 0 : index
    %c0_12 = arith.constant 0 : index
    %11 = vector.load %arg2[%c1_10, %c0_11, %c0_12] : memref<9x4x128xbf16, #tpu.memory_space<vmem>>, vector<1x4x128xbf16>
    %12 = vector.shape_cast %11 : vector<1x4x128xbf16> to vector<4x128xbf16>
    %cst_13 = arith.constant dense<0.000000e+00> : vector<96x128xf32>
    %13 = tpu.matmul %10, %12, %cst_13 {dimension_numbers = #tpu.dot_dimension_numbers<[1], [0], [0], [1], [0, 0, 1, 1], [], []>} : vector<96x4xbf16>, vector<4x128xbf16>, vector<96x128xf32> -> vector<96x128xf32>
    %14 = arith.addf %8, %13 : vector<96x128xf32>
    %c0_14 = arith.constant 0 : index
    %c2 = arith.constant 2 : index
    %c0_15 = arith.constant 0 : index
    %15 = vector.load %arg1[%c0_14, %c2, %c0_15] : memref<1x326x4xbf16, #tpu.memory_space<vmem>>, vector<1x96x4xbf16>
    %16 = vector.shape_cast %15 : vector<1x96x4xbf16> to vector<96x4xbf16>
    %c2_16 = arith.constant 2 : index
    %c0_17 = arith.constant 0 : index
    %c0_18 = arith.constant 0 : index
    %17 = vector.load %arg2[%c2_16, %c0_17, %c0_18] : memref<9x4x128xbf16, #tpu.memory_space<vmem>>, vector<1x4x128xbf16>
    %18 = vector.shape_cast %17 : vector<1x4x128xbf16> to vector<4x128xbf16>
    %cst_19 = arith.constant dense<0.000000e+00> : vector<96x128xf32>
    %19 = tpu.matmul %16, %18, %cst_19 {dimension_numbers = #tpu.dot_dimension_numbers<[1], [0], [0], [1], [0, 0, 1, 1], [], []>} : vector<96x4xbf16>, vector<4x128xbf16>, vector<96x128xf32> -> vector<96x128xf32>
    %20 = arith.addf %14, %19 : vector<96x128xf32>
    %c0_20 = arith.constant 0 : index
    %c18 = arith.constant 18 : index
    %c0_21 = arith.constant 0 : index
    %21 = vector.load %arg1[%c0_20, %c18, %c0_21] : memref<1x326x4xbf16, #tpu.memory_space<vmem>>, vector<1x96x4xbf16>
    %22 = vector.shape_cast %21 : vector<1x96x4xbf16> to vector<96x4xbf16>
    %c3 = arith.constant 3 : index
    %c0_22 = arith.constant 0 : index
    %c0_23 = arith.constant 0 : index
    %23 = vector.load %arg2[%c3, %c0_22, %c0_23] : memref<9x4x128xbf16, #tpu.memory_space<vmem>>, vector<1x4x128xbf16>
    %24 = vector.shape_cast %23 : vector<1x4x128xbf16> to vector<4x128xbf16>
    %cst_24 = arith.constant dense<0.000000e+00> : vector<96x128xf32>
    %25 = tpu.matmul %22, %24, %cst_24 {dimension_numbers = #tpu.dot_dimension_numbers<[1], [0], [0], [1], [0, 0, 1, 1], [], []>} : vector<96x4xbf16>, vector<4x128xbf16>, vector<96x128xf32> -> vector<96x128xf32>
    %26 = arith.addf %20, %25 : vector<96x128xf32>
    %c0_25 = arith.constant 0 : index
    %c19 = arith.constant 19 : index
    %c0_26 = arith.constant 0 : index
    %27 = vector.load %arg1[%c0_25, %c19, %c0_26] : memref<1x326x4xbf16, #tpu.memory_space<vmem>>, vector<1x96x4xbf16>
    %28 = vector.shape_cast %27 : vector<1x96x4xbf16> to vector<96x4xbf16>
    %c4 = arith.constant 4 : index
    %c0_27 = arith.constant 0 : index
    %c0_28 = arith.constant 0 : index
    %29 = vector.load %arg2[%c4, %c0_27, %c0_28] : memref<9x4x128xbf16, #tpu.memory_space<vmem>>, vector<1x4x128xbf16>
    %30 = vector.shape_cast %29 : vector<1x4x128xbf16> to vector<4x128xbf16>
    %cst_29 = arith.constant dense<0.000000e+00> : vector<96x128xf32>
    %31 = tpu.matmul %28, %30, %cst_29 {dimension_numbers = #tpu.dot_dimension_numbers<[1], [0], [0], [1], [0, 0, 1, 1], [], []>} : vector<96x4xbf16>, vector<4x128xbf16>, vector<96x128xf32> -> vector<96x128xf32>
    %32 = arith.addf %26, %31 : vector<96x128xf32>
    %c0_30 = arith.constant 0 : index
    %c20 = arith.constant 20 : index
    %c0_31 = arith.constant 0 : index
    %33 = vector.load %arg1[%c0_30, %c20, %c0_31] : memref<1x326x4xbf16, #tpu.memory_space<vmem>>, vector<1x96x4xbf16>
    %34 = vector.shape_cast %33 : vector<1x96x4xbf16> to vector<96x4xbf16>
    %c5 = arith.constant 5 : index
    %c0_32 = arith.constant 0 : index
    %c0_33 = arith.constant 0 : index
    %35 = vector.load %arg2[%c5, %c0_32, %c0_33] : memref<9x4x128xbf16, #tpu.memory_space<vmem>>, vector<1x4x128xbf16>
    %36 = vector.shape_cast %35 : vector<1x4x128xbf16> to vector<4x128xbf16>
    %cst_34 = arith.constant dense<0.000000e+00> : vector<96x128xf32>
    %37 = tpu.matmul %34, %36, %cst_34 {dimension_numbers = #tpu.dot_dimension_numbers<[1], [0], [0], [1], [0, 0, 1, 1], [], []>} : vector<96x4xbf16>, vector<4x128xbf16>, vector<96x128xf32> -> vector<96x128xf32>
    %38 = arith.addf %32, %37 : vector<96x128xf32>
    %c0_35 = arith.constant 0 : index
    %c36 = arith.constant 36 : index
    %c0_36 = arith.constant 0 : index
    %39 = vector.load %arg1[%c0_35, %c36, %c0_36] : memref<1x326x4xbf16, #tpu.memory_space<vmem>>, vector<1x96x4xbf16>
    %40 = vector.shape_cast %39 : vector<1x96x4xbf16> to vector<96x4xbf16>
    %c6 = arith.constant 6 : index
    %c0_37 = arith.constant 0 : index
    %c0_38 = arith.constant 0 : index
    %41 = vector.load %arg2[%c6, %c0_37, %c0_38] : memref<9x4x128xbf16, #tpu.memory_space<vmem>>, vector<1x4x128xbf16>
    %42 = vector.shape_cast %41 : vector<1x4x128xbf16> to vector<4x128xbf16>
    %cst_39 = arith.constant dense<0.000000e+00> : vector<96x128xf32>
    %43 = tpu.matmul %40, %42, %cst_39 {dimension_numbers = #tpu.dot_dimension_numbers<[1], [0], [0], [1], [0, 0, 1, 1], [], []>} : vector<96x4xbf16>, vector<4x128xbf16>, vector<96x128xf32> -> vector<96x128xf32>
    %44 = arith.addf %38, %43 : vector<96x128xf32>
    %c0_40 = arith.constant 0 : index
    %c37 = arith.constant 37 : index
    %c0_41 = arith.constant 0 : index
    %45 = vector.load %arg1[%c0_40, %c37, %c0_41] : memref<1x326x4xbf16, #tpu.memory_space<vmem>>, vector<1x96x4xbf16>
    %46 = vector.shape_cast %45 : vector<1x96x4xbf16> to vector<96x4xbf16>
    %c7 = arith.constant 7 : index
    %c0_42 = arith.constant 0 : index
    %c0_43 = arith.constant 0 : index
    %47 = vector.load %arg2[%c7, %c0_42, %c0_43] : memref<9x4x128xbf16, #tpu.memory_space<vmem>>, vector<1x4x128xbf16>
    %48 = vector.shape_cast %47 : vector<1x4x128xbf16> to vector<4x128xbf16>
    %cst_44 = arith.constant dense<0.000000e+00> : vector<96x128xf32>
    %49 = tpu.matmul %46, %48, %cst_44 {dimension_numbers = #tpu.dot_dimension_numbers<[1], [0], [0], [1], [0, 0, 1, 1], [], []>} : vector<96x4xbf16>, vector<4x128xbf16>, vector<96x128xf32> -> vector<96x128xf32>
    %50 = arith.addf %44, %49 : vector<96x128xf32>
    %c0_45 = arith.constant 0 : index
    %c38 = arith.constant 38 : index
    %c0_46 = arith.constant 0 : index
    %51 = vector.load %arg1[%c0_45, %c38, %c0_46] : memref<1x326x4xbf16, #tpu.memory_space<vmem>>, vector<1x96x4xbf16>
    %52 = vector.shape_cast %51 : vector<1x96x4xbf16> to vector<96x4xbf16>
    %c8 = arith.constant 8 : index
    %c0_47 = arith.constant 0 : index
    %c0_48 = arith.constant 0 : index
    %53 = vector.load %arg2[%c8, %c0_47, %c0_48] : memref<9x4x128xbf16, #tpu.memory_space<vmem>>, vector<1x4x128xbf16>
    %54 = vector.shape_cast %53 : vector<1x4x128xbf16> to vector<4x128xbf16>
    %cst_49 = arith.constant dense<0.000000e+00> : vector<96x128xf32>
    %55 = tpu.matmul %52, %54, %cst_49 {dimension_numbers = #tpu.dot_dimension_numbers<[1], [0], [0], [1], [0, 0, 1, 1], [], []>} : vector<96x4xbf16>, vector<4x128xbf16>, vector<96x128xf32> -> vector<96x128xf32>
    %56 = arith.addf %50, %55 : vector<96x128xf32>
    %57 = arith.addf %56, %2 : vector<96x128xf32>
    %cst_50 = arith.constant 0.000000e+00 : f32
    %58 = vector.broadcast %cst_50 : f32 to vector<96x128xf32>
    %59 = arith.maximumf %57, %58 : vector<96x128xf32>
    %c0_51 = arith.constant 0 : index
    %c0_52 = arith.constant 0 : index
    %60 = vector.load %arg3[%c0_51, %c0_52] : memref<288x1xf32, #tpu.memory_space<vmem>>, vector<96x1xf32>
    %61 = vector.broadcast %60 : vector<96x1xf32> to vector<96x128xf32>
    %62 = arith.mulf %59, %61 : vector<96x128xf32>
    %cst_53 = arith.constant dense<0.000000e+00> : vector<128xf32>
    %63 = vector.multi_reduction <add>, %62, %cst_53 [0] : vector<96x128xf32> to vector<128xf32>
    %64 = vector.shape_cast %63 : vector<128xf32> to vector<1x128xf32>
    %65 = arith.addf %3, %64 : vector<1x128xf32>
    %c0_54 = arith.constant 0 : index
    %c96 = arith.constant 96 : index
    %c0_55 = arith.constant 0 : index
    %66 = vector.load %arg1[%c0_54, %c96, %c0_55] : memref<1x326x4xbf16, #tpu.memory_space<vmem>>, vector<1x96x4xbf16>
    %67 = vector.shape_cast %66 : vector<1x96x4xbf16> to vector<96x4xbf16>
    %c0_56 = arith.constant 0 : index
    %c0_57 = arith.constant 0 : index
    %c0_58 = arith.constant 0 : index
    %68 = vector.load %arg2[%c0_56, %c0_57, %c0_58] : memref<9x4x128xbf16, #tpu.memory_space<vmem>>, vector<1x4x128xbf16>
    %69 = vector.shape_cast %68 : vector<1x4x128xbf16> to vector<4x128xbf16>
    %cst_59 = arith.constant dense<0.000000e+00> : vector<96x128xf32>
    %70 = tpu.matmul %67, %69, %cst_59 {dimension_numbers = #tpu.dot_dimension_numbers<[1], [0], [0], [1], [0, 0, 1, 1], [], []>} : vector<96x4xbf16>, vector<4x128xbf16>, vector<96x128xf32> -> vector<96x128xf32>
    %c0_60 = arith.constant 0 : index
    %c97 = arith.constant 97 : index
    %c0_61 = arith.constant 0 : index
    %71 = vector.load %arg1[%c0_60, %c97, %c0_61] : memref<1x326x4xbf16, #tpu.memory_space<vmem>>, vector<1x96x4xbf16>
    %72 = vector.shape_cast %71 : vector<1x96x4xbf16> to vector<96x4xbf16>
    %c1_62 = arith.constant 1 : index
    %c0_63 = arith.constant 0 : index
    %c0_64 = arith.constant 0 : index
    %73 = vector.load %arg2[%c1_62, %c0_63, %c0_64] : memref<9x4x128xbf16, #tpu.memory_space<vmem>>, vector<1x4x128xbf16>
    %74 = vector.shape_cast %73 : vector<1x4x128xbf16> to vector<4x128xbf16>
    %cst_65 = arith.constant dense<0.000000e+00> : vector<96x128xf32>
    %75 = tpu.matmul %72, %74, %cst_65 {dimension_numbers = #tpu.dot_dimension_numbers<[1], [0], [0], [1], [0, 0, 1, 1], [], []>} : vector<96x4xbf16>, vector<4x128xbf16>, vector<96x128xf32> -> vector<96x128xf32>
    %76 = arith.addf %70, %75 : vector<96x128xf32>
    %c0_66 = arith.constant 0 : index
    %c98 = arith.constant 98 : index
    %c0_67 = arith.constant 0 : index
    %77 = vector.load %arg1[%c0_66, %c98, %c0_67] : memref<1x326x4xbf16, #tpu.memory_space<vmem>>, vector<1x96x4xbf16>
    %78 = vector.shape_cast %77 : vector<1x96x4xbf16> to vector<96x4xbf16>
    %c2_68 = arith.constant 2 : index
    %c0_69 = arith.constant 0 : index
    %c0_70 = arith.constant 0 : index
    %79 = vector.load %arg2[%c2_68, %c0_69, %c0_70] : memref<9x4x128xbf16, #tpu.memory_space<vmem>>, vector<1x4x128xbf16>
    %80 = vector.shape_cast %79 : vector<1x4x128xbf16> to vector<4x128xbf16>
    %cst_71 = arith.constant dense<0.000000e+00> : vector<96x128xf32>
    %81 = tpu.matmul %78, %80, %cst_71 {dimension_numbers = #tpu.dot_dimension_numbers<[1], [0], [0], [1], [0, 0, 1, 1], [], []>} : vector<96x4xbf16>, vector<4x128xbf16>, vector<96x128xf32> -> vector<96x128xf32>
    %82 = arith.addf %76, %81 : vector<96x128xf32>
    %c0_72 = arith.constant 0 : index
    %c114 = arith.constant 114 : index
    %c0_73 = arith.constant 0 : index
    %83 = vector.load %arg1[%c0_72, %c114, %c0_73] : memref<1x326x4xbf16, #tpu.memory_space<vmem>>, vector<1x96x4xbf16>
    %84 = vector.shape_cast %83 : vector<1x96x4xbf16> to vector<96x4xbf16>
    %c3_74 = arith.constant 3 : index
    %c0_75 = arith.constant 0 : index
    %c0_76 = arith.constant 0 : index
    %85 = vector.load %arg2[%c3_74, %c0_75, %c0_76] : memref<9x4x128xbf16, #tpu.memory_space<vmem>>, vector<1x4x128xbf16>
    %86 = vector.shape_cast %85 : vector<1x4x128xbf16> to vector<4x128xbf16>
    %cst_77 = arith.constant dense<0.000000e+00> : vector<96x128xf32>
    %87 = tpu.matmul %84, %86, %cst_77 {dimension_numbers = #tpu.dot_dimension_numbers<[1], [0], [0], [1], [0, 0, 1, 1], [], []>} : vector<96x4xbf16>, vector<4x128xbf16>, vector<96x128xf32> -> vector<96x128xf32>
    %88 = arith.addf %82, %87 : vector<96x128xf32>
    %c0_78 = arith.constant 0 : index
    %c115 = arith.constant 115 : index
    %c0_79 = arith.constant 0 : index
    %89 = vector.load %arg1[%c0_78, %c115, %c0_79] : memref<1x326x4xbf16, #tpu.memory_space<vmem>>, vector<1x96x4xbf16>
    %90 = vector.shape_cast %89 : vector<1x96x4xbf16> to vector<96x4xbf16>
    %c4_80 = arith.constant 4 : index
    %c0_81 = arith.constant 0 : index
    %c0_82 = arith.constant 0 : index
    %91 = vector.load %arg2[%c4_80, %c0_81, %c0_82] : memref<9x4x128xbf16, #tpu.memory_space<vmem>>, vector<1x4x128xbf16>
    %92 = vector.shape_cast %91 : vector<1x4x128xbf16> to vector<4x128xbf16>
    %cst_83 = arith.constant dense<0.000000e+00> : vector<96x128xf32>
    %93 = tpu.matmul %90, %92, %cst_83 {dimension_numbers = #tpu.dot_dimension_numbers<[1], [0], [0], [1], [0, 0, 1, 1], [], []>} : vector<96x4xbf16>, vector<4x128xbf16>, vector<96x128xf32> -> vector<96x128xf32>
    %94 = arith.addf %88, %93 : vector<96x128xf32>
    %c0_84 = arith.constant 0 : index
    %c116 = arith.constant 116 : index
    %c0_85 = arith.constant 0 : index
    %95 = vector.load %arg1[%c0_84, %c116, %c0_85] : memref<1x326x4xbf16, #tpu.memory_space<vmem>>, vector<1x96x4xbf16>
    %96 = vector.shape_cast %95 : vector<1x96x4xbf16> to vector<96x4xbf16>
    %c5_86 = arith.constant 5 : index
    %c0_87 = arith.constant 0 : index
    %c0_88 = arith.constant 0 : index
    %97 = vector.load %arg2[%c5_86, %c0_87, %c0_88] : memref<9x4x128xbf16, #tpu.memory_space<vmem>>, vector<1x4x128xbf16>
    %98 = vector.shape_cast %97 : vector<1x4x128xbf16> to vector<4x128xbf16>
    %cst_89 = arith.constant dense<0.000000e+00> : vector<96x128xf32>
    %99 = tpu.matmul %96, %98, %cst_89 {dimension_numbers = #tpu.dot_dimension_numbers<[1], [0], [0], [1], [0, 0, 1, 1], [], []>} : vector<96x4xbf16>, vector<4x128xbf16>, vector<96x128xf32> -> vector<96x128xf32>
    %100 = arith.addf %94, %99 : vector<96x128xf32>
    %c0_90 = arith.constant 0 : index
    %c132 = arith.constant 132 : index
    %c0_91 = arith.constant 0 : index
    %101 = vector.load %arg1[%c0_90, %c132, %c0_91] : memref<1x326x4xbf16, #tpu.memory_space<vmem>>, vector<1x96x4xbf16>
    %102 = vector.shape_cast %101 : vector<1x96x4xbf16> to vector<96x4xbf16>
    %c6_92 = arith.constant 6 : index
    %c0_93 = arith.constant 0 : index
    %c0_94 = arith.constant 0 : index
    %103 = vector.load %arg2[%c6_92, %c0_93, %c0_94] : memref<9x4x128xbf16, #tpu.memory_space<vmem>>, vector<1x4x128xbf16>
    %104 = vector.shape_cast %103 : vector<1x4x128xbf16> to vector<4x128xbf16>
    %cst_95 = arith.constant dense<0.000000e+00> : vector<96x128xf32>
    %105 = tpu.matmul %102, %104, %cst_95 {dimension_numbers = #tpu.dot_dimension_numbers<[1], [0], [0], [1], [0, 0, 1, 1], [], []>} : vector<96x4xbf16>, vector<4x128xbf16>, vector<96x128xf32> -> vector<96x128xf32>
    %106 = arith.addf %100, %105 : vector<96x128xf32>
    %c0_96 = arith.constant 0 : index
    %c133 = arith.constant 133 : index
    %c0_97 = arith.constant 0 : index
    %107 = vector.load %arg1[%c0_96, %c133, %c0_97] : memref<1x326x4xbf16, #tpu.memory_space<vmem>>, vector<1x96x4xbf16>
    %108 = vector.shape_cast %107 : vector<1x96x4xbf16> to vector<96x4xbf16>
    %c7_98 = arith.constant 7 : index
    %c0_99 = arith.constant 0 : index
    %c0_100 = arith.constant 0 : index
    %109 = vector.load %arg2[%c7_98, %c0_99, %c0_100] : memref<9x4x128xbf16, #tpu.memory_space<vmem>>, vector<1x4x128xbf16>
    %110 = vector.shape_cast %109 : vector<1x4x128xbf16> to vector<4x128xbf16>
    %cst_101 = arith.constant dense<0.000000e+00> : vector<96x128xf32>
    %111 = tpu.matmul %108, %110, %cst_101 {dimension_numbers = #tpu.dot_dimension_numbers<[1], [0], [0], [1], [0, 0, 1, 1], [], []>} : vector<96x4xbf16>, vector<4x128xbf16>, vector<96x128xf32> -> vector<96x128xf32>
    %112 = arith.addf %106, %111 : vector<96x128xf32>
    %c0_102 = arith.constant 0 : index
    %c134 = arith.constant 134 : index
    %c0_103 = arith.constant 0 : index
    %113 = vector.load %arg1[%c0_102, %c134, %c0_103] : memref<1x326x4xbf16, #tpu.memory_space<vmem>>, vector<1x96x4xbf16>
    %114 = vector.shape_cast %113 : vector<1x96x4xbf16> to vector<96x4xbf16>
    %c8_104 = arith.constant 8 : index
    %c0_105 = arith.constant 0 : index
    %c0_106 = arith.constant 0 : index
    %115 = vector.load %arg2[%c8_104, %c0_105, %c0_106] : memref<9x4x128xbf16, #tpu.memory_space<vmem>>, vector<1x4x128xbf16>
    %116 = vector.shape_cast %115 : vector<1x4x128xbf16> to vector<4x128xbf16>
    %cst_107 = arith.constant dense<0.000000e+00> : vector<96x128xf32>
    %117 = tpu.matmul %114, %116, %cst_107 {dimension_numbers = #tpu.dot_dimension_numbers<[1], [0], [0], [1], [0, 0, 1, 1], [], []>} : vector<96x4xbf16>, vector<4x128xbf16>, vector<96x128xf32> -> vector<96x128xf32>
    %118 = arith.addf %112, %117 : vector<96x128xf32>
    %119 = arith.addf %118, %2 : vector<96x128xf32>
    %cst_108 = arith.constant 0.000000e+00 : f32
    %120 = vector.broadcast %cst_108 : f32 to vector<96x128xf32>
    %121 = arith.maximumf %119, %120 : vector<96x128xf32>
    %c96_109 = arith.constant 96 : index
    %c0_110 = arith.constant 0 : index
    %122 = vector.load %arg3[%c96_109, %c0_110] : memref<288x1xf32, #tpu.memory_space<vmem>>, vector<96x1xf32>
    %123 = vector.broadcast %122 : vector<96x1xf32> to vector<96x128xf32>
    %124 = arith.mulf %121, %123 : vector<96x128xf32>
    %cst_111 = arith.constant dense<0.000000e+00> : vector<128xf32>
    %125 = vector.multi_reduction <add>, %124, %cst_111 [0] : vector<96x128xf32> to vector<128xf32>
    %126 = vector.shape_cast %125 : vector<128xf32> to vector<1x128xf32>
    %127 = arith.addf %65, %126 : vector<1x128xf32>
    %c0_112 = arith.constant 0 : index
    %c192 = arith.constant 192 : index
    %c0_113 = arith.constant 0 : index
    %128 = vector.load %arg1[%c0_112, %c192, %c0_113] : memref<1x326x4xbf16, #tpu.memory_space<vmem>>, vector<1x96x4xbf16>
    %129 = vector.shape_cast %128 : vector<1x96x4xbf16> to vector<96x4xbf16>
    %c0_114 = arith.constant 0 : index
    %c0_115 = arith.constant 0 : index
    %c0_116 = arith.constant 0 : index
    %130 = vector.load %arg2[%c0_114, %c0_115, %c0_116] : memref<9x4x128xbf16, #tpu.memory_space<vmem>>, vector<1x4x128xbf16>
    %131 = vector.shape_cast %130 : vector<1x4x128xbf16> to vector<4x128xbf16>
    %cst_117 = arith.constant dense<0.000000e+00> : vector<96x128xf32>
    %132 = tpu.matmul %129, %131, %cst_117 {dimension_numbers = #tpu.dot_dimension_numbers<[1], [0], [0], [1], [0, 0, 1, 1], [], []>} : vector<96x4xbf16>, vector<4x128xbf16>, vector<96x128xf32> -> vector<96x128xf32>
    %c0_118 = arith.constant 0 : index
    %c193 = arith.constant 193 : index
    %c0_119 = arith.constant 0 : index
    %133 = vector.load %arg1[%c0_118, %c193, %c0_119] : memref<1x326x4xbf16, #tpu.memory_space<vmem>>, vector<1x96x4xbf16>
    %134 = vector.shape_cast %133 : vector<1x96x4xbf16> to vector<96x4xbf16>
    %c1_120 = arith.constant 1 : index
    %c0_121 = arith.constant 0 : index
    %c0_122 = arith.constant 0 : index
    %135 = vector.load %arg2[%c1_120, %c0_121, %c0_122] : memref<9x4x128xbf16, #tpu.memory_space<vmem>>, vector<1x4x128xbf16>
    %136 = vector.shape_cast %135 : vector<1x4x128xbf16> to vector<4x128xbf16>
    %cst_123 = arith.constant dense<0.000000e+00> : vector<96x128xf32>
    %137 = tpu.matmul %134, %136, %cst_123 {dimension_numbers = #tpu.dot_dimension_numbers<[1], [0], [0], [1], [0, 0, 1, 1], [], []>} : vector<96x4xbf16>, vector<4x128xbf16>, vector<96x128xf32> -> vector<96x128xf32>
    %138 = arith.addf %132, %137 : vector<96x128xf32>
    %c0_124 = arith.constant 0 : index
    %c194 = arith.constant 194 : index
    %c0_125 = arith.constant 0 : index
    %139 = vector.load %arg1[%c0_124, %c194, %c0_125] : memref<1x326x4xbf16, #tpu.memory_space<vmem>>, vector<1x96x4xbf16>
    %140 = vector.shape_cast %139 : vector<1x96x4xbf16> to vector<96x4xbf16>
    %c2_126 = arith.constant 2 : index
    %c0_127 = arith.constant 0 : index
    %c0_128 = arith.constant 0 : index
    %141 = vector.load %arg2[%c2_126, %c0_127, %c0_128] : memref<9x4x128xbf16, #tpu.memory_space<vmem>>, vector<1x4x128xbf16>
    %142 = vector.shape_cast %141 : vector<1x4x128xbf16> to vector<4x128xbf16>
    %cst_129 = arith.constant dense<0.000000e+00> : vector<96x128xf32>
    %143 = tpu.matmul %140, %142, %cst_129 {dimension_numbers = #tpu.dot_dimension_numbers<[1], [0], [0], [1], [0, 0, 1, 1], [], []>} : vector<96x4xbf16>, vector<4x128xbf16>, vector<96x128xf32> -> vector<96x128xf32>
    %144 = arith.addf %138, %143 : vector<96x128xf32>
    %c0_130 = arith.constant 0 : index
    %c210 = arith.constant 210 : index
    %c0_131 = arith.constant 0 : index
    %145 = vector.load %arg1[%c0_130, %c210, %c0_131] : memref<1x326x4xbf16, #tpu.memory_space<vmem>>, vector<1x96x4xbf16>
    %146 = vector.shape_cast %145 : vector<1x96x4xbf16> to vector<96x4xbf16>
    %c3_132 = arith.constant 3 : index
    %c0_133 = arith.constant 0 : index
    %c0_134 = arith.constant 0 : index
    %147 = vector.load %arg2[%c3_132, %c0_133, %c0_134] : memref<9x4x128xbf16, #tpu.memory_space<vmem>>, vector<1x4x128xbf16>
    %148 = vector.shape_cast %147 : vector<1x4x128xbf16> to vector<4x128xbf16>
    %cst_135 = arith.constant dense<0.000000e+00> : vector<96x128xf32>
    %149 = tpu.matmul %146, %148, %cst_135 {dimension_numbers = #tpu.dot_dimension_numbers<[1], [0], [0], [1], [0, 0, 1, 1], [], []>} : vector<96x4xbf16>, vector<4x128xbf16>, vector<96x128xf32> -> vector<96x128xf32>
    %150 = arith.addf %144, %149 : vector<96x128xf32>
    %c0_136 = arith.constant 0 : index
    %c211 = arith.constant 211 : index
    %c0_137 = arith.constant 0 : index
    %151 = vector.load %arg1[%c0_136, %c211, %c0_137] : memref<1x326x4xbf16, #tpu.memory_space<vmem>>, vector<1x96x4xbf16>
    %152 = vector.shape_cast %151 : vector<1x96x4xbf16> to vector<96x4xbf16>
    %c4_138 = arith.constant 4 : index
    %c0_139 = arith.constant 0 : index
    %c0_140 = arith.constant 0 : index
    %153 = vector.load %arg2[%c4_138, %c0_139, %c0_140] : memref<9x4x128xbf16, #tpu.memory_space<vmem>>, vector<1x4x128xbf16>
    %154 = vector.shape_cast %153 : vector<1x4x128xbf16> to vector<4x128xbf16>
    %cst_141 = arith.constant dense<0.000000e+00> : vector<96x128xf32>
    %155 = tpu.matmul %152, %154, %cst_141 {dimension_numbers = #tpu.dot_dimension_numbers<[1], [0], [0], [1], [0, 0, 1, 1], [], []>} : vector<96x4xbf16>, vector<4x128xbf16>, vector<96x128xf32> -> vector<96x128xf32>
    %156 = arith.addf %150, %155 : vector<96x128xf32>
    %c0_142 = arith.constant 0 : index
    %c212 = arith.constant 212 : index
    %c0_143 = arith.constant 0 : index
    %157 = vector.load %arg1[%c0_142, %c212, %c0_143] : memref<1x326x4xbf16, #tpu.memory_space<vmem>>, vector<1x96x4xbf16>
    %158 = vector.shape_cast %157 : vector<1x96x4xbf16> to vector<96x4xbf16>
    %c5_144 = arith.constant 5 : index
    %c0_145 = arith.constant 0 : index
    %c0_146 = arith.constant 0 : index
    %159 = vector.load %arg2[%c5_144, %c0_145, %c0_146] : memref<9x4x128xbf16, #tpu.memory_space<vmem>>, vector<1x4x128xbf16>
    %160 = vector.shape_cast %159 : vector<1x4x128xbf16> to vector<4x128xbf16>
    %cst_147 = arith.constant dense<0.000000e+00> : vector<96x128xf32>
    %161 = tpu.matmul %158, %160, %cst_147 {dimension_numbers = #tpu.dot_dimension_numbers<[1], [0], [0], [1], [0, 0, 1, 1], [], []>} : vector<96x4xbf16>, vector<4x128xbf16>, vector<96x128xf32> -> vector<96x128xf32>
    %162 = arith.addf %156, %161 : vector<96x128xf32>
    %c0_148 = arith.constant 0 : index
    %c228 = arith.constant 228 : index
    %c0_149 = arith.constant 0 : index
    %163 = vector.load %arg1[%c0_148, %c228, %c0_149] : memref<1x326x4xbf16, #tpu.memory_space<vmem>>, vector<1x96x4xbf16>
    %164 = vector.shape_cast %163 : vector<1x96x4xbf16> to vector<96x4xbf16>
    %c6_150 = arith.constant 6 : index
    %c0_151 = arith.constant 0 : index
    %c0_152 = arith.constant 0 : index
    %165 = vector.load %arg2[%c6_150, %c0_151, %c0_152] : memref<9x4x128xbf16, #tpu.memory_space<vmem>>, vector<1x4x128xbf16>
    %166 = vector.shape_cast %165 : vector<1x4x128xbf16> to vector<4x128xbf16>
    %cst_153 = arith.constant dense<0.000000e+00> : vector<96x128xf32>
    %167 = tpu.matmul %164, %166, %cst_153 {dimension_numbers = #tpu.dot_dimension_numbers<[1], [0], [0], [1], [0, 0, 1, 1], [], []>} : vector<96x4xbf16>, vector<4x128xbf16>, vector<96x128xf32> -> vector<96x128xf32>
    %168 = arith.addf %162, %167 : vector<96x128xf32>
    %c0_154 = arith.constant 0 : index
    %c229 = arith.constant 229 : index
    %c0_155 = arith.constant 0 : index
    %169 = vector.load %arg1[%c0_154, %c229, %c0_155] : memref<1x326x4xbf16, #tpu.memory_space<vmem>>, vector<1x96x4xbf16>
    %170 = vector.shape_cast %169 : vector<1x96x4xbf16> to vector<96x4xbf16>
    %c7_156 = arith.constant 7 : index
    %c0_157 = arith.constant 0 : index
    %c0_158 = arith.constant 0 : index
    %171 = vector.load %arg2[%c7_156, %c0_157, %c0_158] : memref<9x4x128xbf16, #tpu.memory_space<vmem>>, vector<1x4x128xbf16>
    %172 = vector.shape_cast %171 : vector<1x4x128xbf16> to vector<4x128xbf16>
    %cst_159 = arith.constant dense<0.000000e+00> : vector<96x128xf32>
    %173 = tpu.matmul %170, %172, %cst_159 {dimension_numbers = #tpu.dot_dimension_numbers<[1], [0], [0], [1], [0, 0, 1, 1], [], []>} : vector<96x4xbf16>, vector<4x128xbf16>, vector<96x128xf32> -> vector<96x128xf32>
    %174 = arith.addf %168, %173 : vector<96x128xf32>
    %c0_160 = arith.constant 0 : index
    %c230 = arith.constant 230 : index
    %c0_161 = arith.constant 0 : index
    %175 = vector.load %arg1[%c0_160, %c230, %c0_161] : memref<1x326x4xbf16, #tpu.memory_space<vmem>>, vector<1x96x4xbf16>
    %176 = vector.shape_cast %175 : vector<1x96x4xbf16> to vector<96x4xbf16>
    %c8_162 = arith.constant 8 : index
    %c0_163 = arith.constant 0 : index
    %c0_164 = arith.constant 0 : index
    %177 = vector.load %arg2[%c8_162, %c0_163, %c0_164] : memref<9x4x128xbf16, #tpu.memory_space<vmem>>, vector<1x4x128xbf16>
    %178 = vector.shape_cast %177 : vector<1x4x128xbf16> to vector<4x128xbf16>
    %cst_165 = arith.constant dense<0.000000e+00> : vector<96x128xf32>
    %179 = tpu.matmul %176, %178, %cst_165 {dimension_numbers = #tpu.dot_dimension_numbers<[1], [0], [0], [1], [0, 0, 1, 1], [], []>} : vector<96x4xbf16>, vector<4x128xbf16>, vector<96x128xf32> -> vector<96x128xf32>
    %180 = arith.addf %174, %179 : vector<96x128xf32>
    %181 = arith.addf %180, %2 : vector<96x128xf32>
    %cst_166 = arith.constant 0.000000e+00 : f32
    %182 = vector.broadcast %cst_166 : f32 to vector<96x128xf32>
    %183 = arith.maximumf %181, %182 : vector<96x128xf32>
    %c192_167 = arith.constant 192 : index
    %c0_168 = arith.constant 0 : index
    %184 = vector.load %arg3[%c192_167, %c0_168] : memref<288x1xf32, #tpu.memory_space<vmem>>, vector<96x1xf32>
    %185 = vector.broadcast %184 : vector<96x1xf32> to vector<96x128xf32>
    %186 = arith.mulf %183, %185 : vector<96x128xf32>
    %cst_169 = arith.constant dense<0.000000e+00> : vector<128xf32>
    %187 = vector.multi_reduction <add>, %186, %cst_169 [0] : vector<96x128xf32> to vector<128xf32>
    %188 = vector.shape_cast %187 : vector<128xf32> to vector<1x128xf32>
    %189 = arith.addf %127, %188 : vector<1x128xf32>
    %c0_170 = arith.constant 0 : index
    %c0_171 = arith.constant 0 : index
    %190 = vector.load %arg5[%c0_170, %c0_171] : memref<128x128xf32, #tpu.memory_space<vmem>>, vector<128x128xf32>
    %cst_172 = arith.constant dense<0.000000e+00> : vector<1x128xf32>
    %191 = tpu.matmul %189, %190, %cst_172 {dimension_numbers = #tpu.dot_dimension_numbers<[1], [0], [0], [1], [0, 0, 1, 1], [], []>} : vector<1x128xf32>, vector<128x128xf32>, vector<1x128xf32> -> vector<1x128xf32>
    %c0_173 = arith.constant 0 : index
    %c0_174 = arith.constant 0 : index
    %192 = vector.load %arg6[%c0_173, %c0_174] : memref<1x128xf32, #tpu.memory_space<vmem>>, vector<1x128xf32>
    %193 = arith.addf %191, %192 : vector<1x128xf32>
    %c0_175 = arith.constant 0 : index
    %c0_176 = arith.constant 0 : index
    %c0_177 = arith.constant 0 : index
    %194 = vector.load %arg7[%c0_175, %c0_176, %c0_177] : memref<1x1x128xf32, #tpu.memory_space<vmem>>, vector<1x1x128xf32>
    %195 = vector.shape_cast %194 : vector<1x1x128xf32> to vector<1x128xf32>
    %196 = vector.shape_cast %189 : vector<1x128xf32> to vector<1x1x128xf32>
    tpu.vector_store %arg7[%c0_175, %c0_176, %c0_177], %196 {strides = array<i32>} : memref<1x1x128xf32, #tpu.memory_space<vmem>>, vector<1x1x128xf32>,
    %c0_178 = arith.constant 0 : index
    %c0_179 = arith.constant 0 : index
    %c0_180 = arith.constant 0 : index
    %197 = vector.load %arg8[%c0_178, %c0_179, %c0_180] : memref<1x1x128xf32, #tpu.memory_space<vmem>>, vector<1x1x128xf32>
    %198 = vector.shape_cast %197 : vector<1x1x128xf32> to vector<1x128xf32>
    %199 = vector.shape_cast %193 : vector<1x128xf32> to vector<1x1x128xf32>
    tpu.vector_store %arg8[%c0_178, %c0_179, %c0_180], %199 {strides = array<i32>} : memref<1x1x128xf32, #tpu.memory_space<vmem>>, vector<1x1x128xf32>,
    return
  }
  func.func @transform_0(%arg0: i32) -> (i32, i32, i32) {
    %c0_i32 = arith.constant 0 : i32
    %c0_i32_0 = arith.constant 0 : i32
    %c0_i32_1 = arith.constant 0 : i32
    return %arg0, %c0_i32, %c0_i32_0 : i32, i32, i32
  }
  func.func @transform_1(%arg0: i32) -> (i32, i32, i32) {
    %c0_i32 = arith.constant 0 : i32
    %c0_i32_0 = arith.constant 0 : i32
    %c0_i32_1 = arith.constant 0 : i32
    %c0_i32_2 = arith.constant 0 : i32
    return %c0_i32, %c0_i32_0, %c0_i32_1 : i32, i32, i32
  }
  func.func @transform_2(%arg0: i32) -> (i32, i32) {
    %c0_i32 = arith.constant 0 : i32
    %c0_i32_0 = arith.constant 0 : i32
    %c0_i32_1 = arith.constant 0 : i32
    return %c0_i32, %c0_i32_0 : i32, i32
  }
  func.func @transform_3(%arg0: i32) -> (i32, i32) {
    %c0_i32 = arith.constant 0 : i32
    %c0_i32_0 = arith.constant 0 : i32
    %c0_i32_1 = arith.constant 0 : i32
    return %c0_i32, %c0_i32_0 : i32, i32
  }
  func.func @transform_4(%arg0: i32) -> (i32, i32) {
    %c0_i32 = arith.constant 0 : i32
    %c0_i32_0 = arith.constant 0 : i32
    %c0_i32_1 = arith.constant 0 : i32
    return %c0_i32, %c0_i32_0 : i32, i32
  }
  func.func @transform_5(%arg0: i32) -> (i32, i32) {
    %c0_i32 = arith.constant 0 : i32
    %c0_i32_0 = arith.constant 0 : i32
    %c0_i32_1 = arith.constant 0 : i32
    return %c0_i32, %c0_i32_0 : i32, i32
  }
  func.func @transform_6(%arg0: i32) -> (i32, i32, i32) {
    %c0_i32 = arith.constant 0 : i32
    %c0_i32_0 = arith.constant 0 : i32
    %c0_i32_1 = arith.constant 0 : i32
    return %arg0, %c0_i32, %c0_i32_0 : i32, i32, i32
  }
  func.func @transform_7(%arg0: i32) -> (i32, i32, i32) {
    %c0_i32 = arith.constant 0 : i32
    %c0_i32_0 = arith.constant 0 : i32
    %c0_i32_1 = arith.constant 0 : i32
    return %arg0, %c0_i32, %c0_i32_0 : i32, i32, i32
  }
}

</mosaic_0001>

<bundles_post_ra>
// kernel: det_forward.1
= control target key start
LH: loop header
LB: loop body
LE: loop exit
PB: predicated region body
PF: predicated region fallthrough
CT: control target
= control target key end

     0   :  { %13 = vsyncpa [#allocation3], 0  ;;  %s7956_s0 = inlined_call_operand.vmem [shape: bf16[2,326,4], index: 0, kind: input, shape index: {}]   ;;  %s7957_s1 = inlined_call_operand.vmem [shape: bf16[9,4,128], index: 1, kind: input, shape index: {}]   ;;  %s7958_s2 = inlined_call_operand.vmem [shape: f32[288,1], index: 2, kind: input, shape index: {}]   ;;  %s7959_s3 = inlined_call_operand.vmem [shape: f32[1,128], index: 3, kind: input, shape index: {}]   ;;  %s7960_s4 = inlined_call_operand.vmem [shape: f32[128,128], index: 4, kind: input, shape index: {}]   ;;  %s7961_s5 = inlined_call_operand.vmem [shape: f32[1,128], index: 5, kind: input, shape index: {}]   ;;  %s7962_s6 = inlined_call_operand.hbm [shape: f32[2,1,128], index: 6, kind: output, shape index: {0}]   ;;  %s7963_s7 = inlined_call_operand.hbm [shape: f32[2,1,128], index: 7, kind: output, shape index: {1}]  }
   0x1   :  { %15 = vsyncpa [#allocation3 + $0x1], 0 }
   0x2   :  { %16 = vsyncpa [#allocation5], 0 }
   0x3   :  { %18 = vsyncpa [#allocation5 + $0x1], 0  ;;  %s6523_s24 = smov 0   ;;  %s6525_s25 = smov 0  }
   0x4   :  { %s6527_s26 = smov 0   ;;  %s6529_s27 = smov 0  }
   0x5 LB: > { %s6544_s28 = sadd.s32 4294967295, %s6475_s27   ;;  %s5030_s29 = sadd.s32 4294967294, %s6475_s27   ;;  %s6475_s27 = sphi %s6529_s27, %s7969_s27   ;;  %s6471_s26 = sphi %s6527_s26, %s7968_s26   ;;  %s6467_s25 = sphi %s6525_s25, %s7967_s25   ;;  %s6463_s24 = sphi %s6523_s24, %s7966_s24  }
   0x6   : > { %s6548_s30 = sadd.s32 1, %s6475_s27   ;;  %s162_s8 = sadd.s32 1, %s6471_s26 }
   0x7   : > { %s159_s9 = ssub.s32 %s6475_s27, %s6548_s30  ;;  %p172_p0 = scmp.ne.s32.totalorder %s6471_s26, %s6467_s25 }
   0x8   : > { %p160_p1 = scmp.eq.s32.totalorder %s159_s9, 0  ;;  %p173_p2 = scmp.eq.s32.totalorder %s6544_s28, 1 }
   0x9   : > { %p178_p3 = scmp.ne.s32.totalorder %s6467_s25, %s6463_s24  ;;  %p179_p4 = scmp.eq.s32.totalorder %s5030_s29, 1 }
   0xa   : > { %s6559_s10 = scalar_select %p160_p1, %s6471_s26, %s162_s8  }
   0xb   : > { %p6561_p5 = por %p173_p2, %p172_p0  ;;  %p6565_p6 = por %p179_p4, %p178_p3 }
   0xc   : > { %p5033_p7 = scmp.ge.s32.totalorder %s6475_s27, 1  ;;  %p246_p8 = scmp.lt.s32.totalorder %s6475_s27, 3 }
   0xe   : > { %p247_p9 = pnand %p5033_p7, %p246_p8 }
   0xf   : > { %vm415_vm0 = vcmask (!%p247_p9), 1041408   ;;  %v5078_v0 = vld [vmem:[%s7957_s1 + $0x8] sm:$0x3] (!%p247_p9)  ;;  %v6577_v1 = vld [vmem:[%s7957_s1 + $0x2] sm:$0x3] (!%p247_p9)  ;;  %p281_p10 = scmp.lt.s32.totalorder (!%p247_p9), %s6544_s28, 1 }
  0x10   : > { %250 = sbr.rel (%p247_p9) target bundleno = 839 (0x347), region = 44  ;;  %6223 = vmatprep.subr.msk.bf16.mxu0 (!%p247_p9), %vm415_vm0, %v5078_v0  ;;  %6219 = vmatprep.subr.msk.bf16.mxu1 (!%p247_p9), %vm415_vm0, %v6577_v1  ;;  %v6584_v2 = vsel (!%p247_p9), %vm415_vm0, %v5078_v0, 0  ;;  %v6588_v3 = vsel (!%p247_p9), %vm415_vm0, %v6577_v1, 0  ;;  %v5086_v4 = vld [vmem:[%s7957_s1 + $0xa] sm:$0x3] (!%p247_p9)  ;;  %vm396_vm2 = vcmask (!%p247_p9), 31744  }
  0x11   : > { %5551 = vmatpush3.bf16.msra.mxu0 (!%p247_p9), %v6584_v2  ;;  %5495 = vmatpush3.bf16.msra.mxu1 (!%p247_p9), %v6588_v3  ;;  %v6600_v5 = vld [vmem:[%s7957_s1] sm:$0x3] (!%p247_p9)  ;;  %vm343_vm1 = vsmask.f32 (!%p247_p9), 7424  ;;  %v6610_v6 = vsel (!%p247_p9), %vm415_vm0, %v5086_v4, 0  ;;  %vm1094_vm4 = vcmask (!%p247_p9), 1045504  }
  0x12   : > { %6224 = vmatprep.subr.msk.bf16.mxu0 (!%p247_p9), %vm415_vm0, %v5086_v4  ;;  %6220 = vmatprep.subr.msk.bf16.mxu1 (!%p247_p9), %vm415_vm0, %v6600_v5  ;;  %vm911_vm3 = vsmask.f32 (!%p247_p9), 6400  ;;  %v6625_v12 = vsel (!%p247_p9), %vm415_vm0, %v6600_v5, 0  ;;  %v6661_v39 = vld [vmem:[%s7957_s1 + $0x4] sm:$0x3] (!%p247_p9)  ;;  %vm602_vm5 = vcmask (!%p247_p9), 1046528  }
  0x13   : > { %v6693_v0 = vld [vmem:[%s7957_s1 + $0xc] sm:$0x3] (!%p247_p9)  ;;  %vm1403_vm6 = vsmask.f32 (!%p247_p9), 5376  ;;  %vm1586_vm7 = vcmask (!%p247_p9), 1044480   ;;  %vm6479_vm8 = vmmov (!%p247_p9), 0  }
  0x14   : > { %s7875_s20 = sand.u32 (!%p247_p9), 1, %s6467_s25   ;;  %s6481_s15 = smov (!%p247_p9), [#allocation2]  }
  0x15   : > { %s274_s21 = scalar_lea.vmem (!%p247_p9), [#allocation2], %s7875_s20  ;;  %s4918_s14 = scalar_lea.sflag (!%p247_p9), [#allocation3], %s7875_s20 }
  0x16   : > { %s4934_s23 = sshll.u32 (!%p247_p9), %s274_s21, 4  ;;  %s6385_s16 = sshll.u32 (!%p247_p9), %s6481_s15, 4  ;;  %s4935_s23 = int_to_ptr.vmem [resolvable:$true] %s4934_s23  ;;  %s6386_s16 = int_to_ptr.vmem [resolvable:$false] %s6385_s16 }
  0x17   : > { %s282_s17 = scalar_select %p281_p10, %s6544_s28, 1 }
  0x18   : > { %p6388_p0 = scmp.lt.s32.totalorder %s4935_s23, %s6386_s16 }
  0x19   : > { %s6246_s22 = smul.u32 164, %s282_s17  ;;  %s6387_s17 = scalar_lea.vmem %s6386_s16, 32 }
  0x1b   : > { %s6607_s8 = scalar_lea.vmem %s7956_s0, %s6246_s22  ;;  %s5284_s22 = sshll.u32 %s6544_s28, 4 }
  0x1c   : > { %v294_v7 = vld [vmem:[%s6607_s8] sm:$0xf]  ;;  %v6614_v8 = vld [vmem:[%s6607_s8 + $0x4] sm:$0xf]  ;;  %v6620_v10 = vld [vmem:[%s6607_s8 + $0x8] sm:$0xff]   ;;  %s7884_s13 = scalar_lea.hbm %s7962_s6, %s5284_s22 }
  0x1d   : > { %v6617_v9 = vcombine.low %v294_v7, %v6614_v8  ;;  %v730_v11 = vld [vmem:[%s6607_s8 + $0x8] sm:$0xe]  ;;  %v6628_v13 = vld [vmem:[%s6607_s8 + $0xc] sm:$0xf]  ;;  %v352_v16 = vshll.u32 %v6620_v10, 16  ;;  %v356_v17 = vshrl.u32 %v6620_v10, 16 }
  0x1e   : > { %v6635_v18 = vld [vmem:[%s6607_s8 + $0x10] sm:$0xff]   ;;  %v6641_v20 = vcombine.low %v730_v11, %v6628_v13  ;;  %v6649_v28 = vld [vmem:[%s6607_s8 + $0x18] sm:$0xff]   ;;  %v6655_v34 = vld [vmem:[%s6607_s8 + $0x20] sm:$0xff]  }
  0x1f   : > { %v345_v14 = vshrl.u32 %v6617_v9, 16  ;;  %v347_v15 = vshll.u32 %v6617_v9, 16  ;;  %v6638_v19 = vld [vmem:[%s6607_s8 + $0x10] sm:$0xff]   ;;  %v354_v22 = vrot.slane %v352_v16, 1  ;;  %v921_v23 = vshrl.u32 %v6635_v18, 16  ;;  %v6652_v33 = vld [vmem:[%s6607_s8 + $0x18] sm:$0xff]  }
  0x20   : > { %v924_v24 = vshll.u32 %v6635_v18, 16  ;;  %v913_v25 = vshrl.u32 %v6641_v20, 16  ;;  %v916_v26 = vshll.u32 %v6641_v20, 16  ;;  %v360_v27 = vshll.u32 %v6638_v19, 16  ;;  %v6670_v48 = vld [vmem:[%s6607_s8 + $0x20] sm:$0xff]   ;;  %v6673_v49 = vld [vmem:[%s6607_s8 + $0x28] sm:$0xff]  }
  0x21   : > { %v349_v21 = vrot.slane %v347_v15, 1  ;;  %v358_v30 = vor.u32 %v356_v17, %v354_v22  ;;  %v923_v31 = vrot.slane %v921_v23, 1  ;;  %v930_v38 = vshrl.u32 %v6649_v28, 16  ;;  %v6679_v54 = vld [vmem:[%s6607_s8 + $0x28] sm:$0xff]   ;;  %v6685_v59 = vld [vmem:[%s6607_s8 + $0x30] sm:$0xff]  }
  0x22   : > { %v926_v32 = vrot.slane %v924_v24, 2  ;;  %v915_v35 = vrot.slane %v913_v25, 1  ;;  %v918_v36 = vrot.slane %v916_v26, 2  ;;  %v362_v37 = vrot.slane %v360_v27, 1 }
  0x23   : > { %v350_v29 = vor.u32 %v349_v21, %v345_v14  ;;  %v933_v42 = vshll.u32 %v6649_v28, 16  ;;  %v364_v43 = vshrl.u32 %v6638_v19, 16  ;;  %v932_v46 = vrot.slane %v930_v38, 1  ;;  %v6707_v26 = vld [vmem:[%s6607_s8 + $0x30] ss:$0 sps:$4 sm:$0x11]  }
  0x24   : > { %v927_v41 = vor.u32 %v926_v32, %v923_v31  ;;  %v919_v44 = vor.u32 %v918_v36, %v915_v35  ;;  %v363_v45 = vsel %vm343_vm1, %v358_v30, %v362_v37  ;;  %v368_v47 = vshll.u32 %v6652_v33, 16  ;;  %v6716_v38 = vld [vmem:[%s6607_s8 + $0x38] ss:$0 sps:$4 sm:$0x33]  }
  0x25   : > { %v355_v40 = vsel %vm343_vm1, %v350_v29, %v354_v22  ;;  %v935_v50 = vrot.slane %v933_v42, 2  ;;  %v366_v51 = vor.u32 %v364_v43, %v362_v37  ;;  %v939_v52 = vshrl.u32 %v6655_v34, 16 }
  0x26   : > { %5496 = vmatprep.mubr.msk.bf16.mxu1 %vm396_vm2, %v355_v40  ;;  %v942_v53 = vshll.u32 %v6655_v34, 16  ;;  %v928_v55 = vsel %vm911_vm3, %v919_v44, %v927_v41  ;;  %v370_v56 = vrot.slane %v368_v47, 1  ;;  %v372_v57 = vshrl.u32 %v6652_v33, 16 }
  0x27   : > { %5497 = vmatmul.mubr.msk.bf16.vlgmr.msra.gmra.mrb[0].mxu1 %vm396_vm2, %v363_v45  ;;  %v376_v58 = vshll.u32 %v6670_v48, 16  ;;  %5552 = vmatprep.mubr.msk.bf16.mxu0 %vm396_vm2, %v928_v55  ;;  %v936_v60 = vor.u32 %v935_v50, %v932_v46  ;;  %v941_v61 = vrot.slane %v939_v52, 1  ;;  %v948_v63 = vshrl.u32 %v6673_v49, 16 }
  0x28   : > { %5509 = vmatpush3.bf16.msra.mxu1 %v6625_v12  ;;  %v944_v62 = vrot.slane %v942_v53, 2  ;;  %v371_v4 = vsel %vm343_vm1, %v366_v51, %v370_v56  ;;  %v374_v7 = vor.u32 %v372_v57, %v370_v56  ;;  %v951_v14 = vshll.u32 %v6673_v49, 16 }
  0x29   : > { %6221 = vmatprep.subr.msk.bf16.mxu1 %vm415_vm0, %v6661_v39  ;;  %v378_v11 = vrot.slane %v376_v58, 1  ;;  %v937_v15 = vsel %vm911_vm3, %v927_v41, %v936_v60  ;;  %5500 = vmatprep.mubr.msk.bf16.mxu1 %vm396_vm2, %v371_v4  ;;  %v950_v17 = vrot.slane %v948_v63, 1  ;;  %v380_v21 = vshrl.u32 %v6670_v48, 16  ;;  %v1088_v41 = vld [vmem:[%s6607_s8 + $0x8] sm:$0xc] }
  0x2a   : > { %v945_v16 = vor.u32 %v944_v62, %v941_v61  ;;  %5553 = vmatmul.mubr.msk.bf16.vlgmr.msra.gmra.mrb[0].mxu0 %vm396_vm2, %v937_v15  ;;  %v953_v23 = vrot.slane %v951_v14, 2  ;;  %v384_v24 = vshll.u32 %v6679_v54, 16  ;;  %v957_v25 = vshrl.u32 %v6685_v59, 16 }
  0x2b   : > { %v379_v22 = vsel %vm343_vm1, %v374_v7, %v378_v11  ;;  %5565 = vmatpush3.bf16.msra.mxu0 %v6610_v6  ;;  %v382_v29 = vor.u32 %v380_v21, %v378_v11  ;;  %v960_v30 = vshll.u32 %v6685_v59, 16  ;;  %v388_v31 = vshrl.u32 %v6679_v54, 16  ;;  %v6751_v11 = vld [vmem:[%s7957_s1 + $0x6] sm:$0x3]  ;;  %v596_v21 = vld [vmem:[%s6607_s8] sm:$0xe] }
  0x2c   : > { %v946_v27 = vsel %vm911_vm3, %v936_v60, %v945_v16  ;;  %v954_v32 = vor.u32 %v953_v23, %v950_v17  ;;  %v386_v35 = vrot.slane %v384_v24, 1  ;;  %v959_v36 = vrot.slane %v957_v25, 1  ;;  %6225 = vmatprep.subr.msk.bf16.mxu0 %vm415_vm0, %v6693_v0 }
  0x2d   : > { %5556 = vmatprep.mubr.msk.bf16.mxu0 %vm396_vm2, %v946_v27  ;;  %v392_v37 = vshll.u32 %v6707_v26, 16  ;;  %v962_v40 = vrot.slane %v960_v30, 2  ;;  %v966_v47 = vshrl.u32 %v6716_v38, 16  ;;  %v969_v50 = vshll.u32 %v6716_v38, 16 }
  0x2e   : > { %v387_v42 = vsel %vm343_vm1, %v382_v29, %v386_v35  ;;  %v390_v43 = vor.u32 %v388_v31, %v386_v35  ;;  %v955_v45 = vsel %vm911_vm3, %v945_v16, %v954_v32  ;;  %v5087_v51 = vcombine.low %v1088_v41, %v6628_v13  ;;  %v1222_v31 = vld [vmem:[%s6607_s8 + $0x10] sm:$0xc] }
  0x2f   : > { %5501 = vmatmul.mubr.msk.bf16.gmra.mrb[4].mxu1 %vm396_vm2, %v379_v22  ;;  %v394_v44 = vrot.slane %v392_v37, 1  ;;  %v963_v46 = vor.u32 %v962_v40, %v959_v36  ;;  %v968_v53 = vrot.slane %v966_v47, 1  ;;  %v971_v55 = vrot.slane %v969_v50, 2  ;;  %v6811_v40 = vld [vmem:[%s6607_s8 + $0x18] sm:$0xff]   ;;  %v6829_v50 = vld [vmem:[%s6607_s8 + $0x28] sm:$0xff]  }
  0x30   : > { %5504 = vmatprep.mubr.msk.bf16.mxu1 %vm396_vm2, %v387_v42  ;;  %v1095_v58 = vrot.slane %v5087_v51, 2  ;;  %v1096_v60 = vrot.slane %v6635_v18, 2  ;;  %v778_v62 = vrot.slane %v6641_v20, 1  ;;  %v779_v63 = vrot.slane %v6635_v18, 1 }
  0x31   : > { %v964_v52 = vsel %vm911_vm3, %v954_v32, %v963_v46  ;;  %v395_v56 = vsel %vm343_vm1, %v390_v43, %v394_v44  ;;  %v972_v57 = vor.u32 %v971_v55, %v968_v53  ;;  %v1098_v4 = vrot.slane %v6649_v28, 2  ;;  %v6802_v32 = vld [vmem:[%s6607_s8 + $0x14] sm:$0xf] }
  0x32   : > { %5557 = vmatmul.mubr.msk.bf16.gmra.mrb[4].mxu0 %vm396_vm2, %v955_v45  ;;  %v1097_v61 = vsel %vm1094_vm4, %v1095_v58, %v1096_v60  ;;  %v6745_v7 = vsel %vm415_vm0, %v6661_v39, 0  ;;  %v6754_v20 = vsel %vm602_vm5, %v778_v62, %v779_v63  ;;  %v781_v18 = vrot.slane %v6649_v28, 1 }
  0x33   : > { %5560 = vmatprep.mubr.msk.bf16.mxu0 %vm396_vm2, %v964_v52  ;;  %v973_v13 = vsel %vm911_vm3, %v963_v46, %v972_v57  ;;  %v783_v14 = vrot.slane %v6655_v34, 1  ;;  %v1099_v15 = vsel %vm1094_vm4, %v1096_v60, %v1098_v4  ;;  %v6766_v16 = vsel %vm415_vm0, %v6693_v0, 0  ;;  %v6824_v46 = vld [vmem:[%s6607_s8 + $0x20] sm:$0xff]   ;;  %v6847_v57 = vld [vmem:[%s6607_s8 + $0x30] sm:$0xff]  }
  0x34   : > { %v6771_v17 = vsel %vm602_vm5, %v779_v63, %v781_v18  ;;  %v785_v0 = vrot.slane %v6673_v49, 1  ;;  %v787_v23 = vrot.slane %v6685_v59, 1  ;;  %v1102_v24 = vrot.slane %v6673_v49, 2  ;;  %v6862_v63 = vld [vmem:[%s7957_s1 + $0x10] sm:$0x3] }
  0x35   : > { %v6776_v22 = vsel %vm602_vm5, %v781_v18, %v783_v14  ;;  %v5057_v25 = vcombine.low %v596_v21, %v6614_v8  ;;  %v1104_v29 = vrot.slane %v6685_v59, 2  ;;  %v604_v35 = vrot.slane %v6620_v10, 1 }
  0x36   : > { %v6789_v27 = vsel %vm602_vm5, %v783_v14, %v785_v0  ;;  %v6796_v30 = vsel %vm602_vm5, %v785_v0, %v787_v23  ;;  %v5095_v37 = vcombine.low %v1222_v31, %v6802_v32  ;;  %v1106_v41 = vrot.slane %v6716_v38, 2  ;;  %v6319_v0 = vld [vmem:[%s6607_s8 + $0x40] ss:$0 sps:$4 sm:$0x33]  }
  0x37   : > { %5505 = vmatmul.mubr.msk.bf16.gmra.mrb[8].mxu1 %vm396_vm2, %v395_v56  ;;  %v603_v49 = vrot.slane %v5057_v25, 1  ;;  %v1105_v36 = vsel %vm1094_vm4, %v1102_v24, %v1104_v29  ;;  %v1271_v44 = vrot.slane %v6811_v40, 2  ;;  %v608_v47 = vrot.slane %v6652_v33, 1 }
  0x38   : > { %5510 = vmatprep.mubr.msk.bf16.mxu1 %vm396_vm2, %v6617_v9  ;;  %v1100_v9 = vrot.slane %v6655_v34, 2  ;;  %v5108_v34 = vld [vmem:[%s7957_s1 + $0xe] sm:$0x3]  ;;  %v1270_v43 = vrot.slane %v5095_v37, 2  ;;  %v1107_v45 = vsel %vm1094_vm4, %v1104_v29, %v1106_v41  ;;  %v6838_v53 = vsel %vm415_vm0, %v6751_v11, 0  ;;  %v1740_v41 = vld [vmem:[%s7958_s2 + $0x10] sm:$0xff] }
  0x39   : > { %v605_v42 = vsel %vm602_vm5, %v603_v49, %v604_v35  ;;  %v610_v55 = vrot.slane %v6670_v48, 1  ;;  %v612_v58 = vrot.slane %v6679_v54, 1  ;;  %v6853_v60 = vsel %vm415_vm0, %v5108_v34, 0 }
  0x3a   : > { %5561 = vmatmul.mubr.msk.bf16.gmra.mrb[8].mxu0 %vm396_vm2, %v973_v13  ;;  %v1101_v28 = vsel %vm1094_vm4, %v1098_v4, %v1100_v9  ;;  %v1103_v8 = vsel %vm1094_vm4, %v1100_v9, %v1102_v24  ;;  %v1272_v38 = vsel %vm1094_vm4, %v1270_v43, %v1271_v44  ;;  %v1405_v62 = vshrl.u32 %v5095_v37, 16  ;;  %v1738_v9 = vld [vmem:[%s7958_s2] sm:$0xff] }
  0x3b   : > { %5566 = vmatprep.mubr.msk.bf16.mxu0 %vm396_vm2, %v1097_v61  ;;  %v6857_v61 = vld [vmem:[%s6607_s8 + $0x38] sm:$0xff]   ;;  %v1413_v4 = vshrl.u32 %v6811_v40, 16  ;;  %v1277_v18 = vrot.slane %v6847_v57, 2  ;;  %v613_v14 = vsel %vm602_vm5, %v610_v55, %v612_v58  ;;  %v6477_v21 = vmov 0  }
  0x3c   : > { %6295 = vset.pattern.permute.xlu0 %v6477_v21  ;;  %v614_v24 = vrot.slane %v6707_v26, 1  ;;  %v1407_v25 = vrot.slane %v1405_v62, 2  ;;  %6296 = vset.pattern.permute.xlu1 %v6477_v21  ;;  %v1422_v43 = vshrl.u32 %v6824_v46, 16  ;;  %v1588_v59 = vrot.slane %v6811_v40, 3 }
  0x3d   : > { %1752 = vperm.xlu0 %6295, %v1738_v9   ;;  %v1415_v31 = vrot.slane %v1413_v4, 2  ;;  %v1443_v4 = vshll.u32 %v6847_v57, 16  ;;  %v1449_v9 = vshrl.u32 %v6857_v61, 16 }
  0x3e   : > { %v615_v26 = vsel %vm602_vm5, %v612_v58, %v614_v24  ;;  %v6943_v24 = vsel %vm415_vm0, %v6862_v63, 0 }
  0x3f   : > { %5511 = vmatmul.mubr.msk.bf16.vlgmr.msra.gmra.mrb[0].mxu1 %vm396_vm2, %v6620_v10  ;;  %v606_v10 = vrot.slane %v6638_v19, 1 }
  0x40   : > { %5514 = vmatprep.mubr.msk.bf16.mxu1 %vm396_vm2, %v6638_v19  ;;  %5523 = vmatpush3.bf16.msra.mxu1 %v6745_v7  ;;  %v1273_v19 = vrot.slane %v6824_v46, 2 }
  0x41   : > { %6222 = vmatprep.subr.msk.bf16.mxu1 %vm415_vm0, %v6751_v11  ;;  %v607_v51 = vsel %vm602_vm5, %v604_v35, %v606_v10  ;;  %v609_v52 = vsel %vm602_vm5, %v606_v10, %v608_v47 }
  0x42   : > { %5567 = vmatmul.mubr.msk.bf16.vlgmr.msra.gmra.mrb[0].mxu0 %vm396_vm2, %v1099_v15  ;;  %v1274_v56 = vsel %vm1094_vm4, %v1271_v44, %v1273_v19  ;;  %v1279_v15 = vrot.slane %v6857_v61, 2  ;;  %v1425_v44 = vshll.u32 %v6824_v46, 16 }
  0x43   : > { %5579 = vmatpush3.bf16.msra.mxu0 %v6766_v16  ;;  %5570 = vmatprep.mubr.msk.bf16.mxu0 %vm396_vm2, %v1101_v28  ;;  %v1416_v28 = vshll.u32 %v6811_v40, 16 }
  0x44   : > { %6226 = vmatprep.subr.msk.bf16.mxu0 %vm415_vm0, %v5108_v34  ;;  %v3232_v34 = vld [vmem:[%s7958_s2 + $0x60] sm:$0xff]  ;;  %v1280_v35 = vsel %vm1094_vm4, %v1277_v18, %v1279_v15  ;;  %v1427_v58 = vrot.slane %v1425_v44, 3 }
  0x45   : > { %3246 = vperm.xlu1 %6296, %v3232_v34   ;;  %v6934_v34 = vld [vmem:[%s6607_s8 + $0x40] ss:$0 sps:$4 sm:$0x77]  }
  0x46   : > { %v3236_v44 = vld [vmem:[%s7958_s2 + $0x80] sm:$0xff] }
  0x47   : > { %5515 = vmatmul.mubr.msk.bf16.gmra.mrb[4].mxu1 %vm396_vm2, %v6652_v33  ;;  %v1275_v33 = vrot.slane %v6829_v50, 2 }
  0x48   : > { %5518 = vmatprep.mubr.msk.bf16.mxu1 %vm396_vm2, %v6670_v48  ;;  %v1408_v48 = vshll.u32 %v5095_v37, 16  ;;  %v3233_v37 = vld [vmem:[%s7958_s2 + $0x68] sm:$0xff] }
  0x49   : > { %v1276_v13 = vsel %vm1094_vm4, %v1273_v19, %v1275_v33  ;;  %v1278_v49 = vsel %vm1094_vm4, %v1275_v33, %v1277_v18  ;;  %3251 = vperm.xlu1 %6296, %v3233_v37   ;;  %v1840_v19 = vld [vmem:[%s6607_s8 + $0x30] sm:$0xf]  ;;  %v4726_v33 = vld [vmem:[%s7958_s2 + $0xc0] sm:$0xff]  ;;  %v1741_v18 = vld [vmem:[%s7958_s2 + $0x18] sm:$0xff]  ;;  %v1458_v37 = vshrl.u32 %v6934_v34, 16 }
  0x4a   : > { %5571 = vmatmul.mubr.msk.bf16.gmra.mrb[4].mxu0 %vm396_vm2, %v1103_v8  ;;  %v1410_v29 = vrot.slane %v1408_v48, 3  ;;  %v1739_v8 = vld [vmem:[%s7958_s2 + $0x8] sm:$0xff] }
  0x4b   : > { %5574 = vmatprep.mubr.msk.bf16.mxu0 %vm396_vm2, %v1105_v36  ;;  %v1418_v36 = vrot.slane %v1416_v28, 3  ;;  %1757 = vperm.xlu0 %6295, %v1739_v8   ;;  %v1451_v8 = vrot.slane %v1449_v9, 2 }
  0x4c   : > { %v1411_v10 = vor.u32 %v1410_v29, %v1407_v25  ;;  %v1445_v29 = vrot.slane %v1443_v4, 3 }
  0x4f   : > { %5519 = vmatmul.mubr.msk.bf16.gmra.mrb[8].mxu1 %vm396_vm2, %v6679_v54  ;;  %v611_v54 = vsel %vm602_vm5, %v608_v47, %v610_v55  ;;  %v1431_v47 = vshrl.u32 %v6829_v50, 16  ;;  %1762 = vperm.xlu0 %6295, %v1740_v41   ;;  %v6963_v41 = vld [vmem:[%s6607_s8 + $0x40] sm:$0xff]  }
  0x50   : > { %5524 = vmatprep.mubr.msk.bf16.mxu1 %vm396_vm2, %v605_v42  ;;  %v1281_v42 = vrot.slane %v6319_v0, 2  ;;  %v3235_v0 = vld [vmem:[%s7958_s2 + $0x78] sm:$0xff] }
  0x51   : > { %v1433_v62 = vrot.slane %v1431_v47, 2 }
  0x52   : > { %5575 = vmatmul.mubr.msk.bf16.gmra.mrb[8].mxu0 %vm396_vm2, %v1107_v45  ;;  %v1419_v45 = vor.u32 %v1418_v36, %v1415_v31  ;;  %v1282_v55 = vsel %vm1094_vm4, %v1279_v15, %v1281_v42  ;;  %v1452_v15 = vshll.u32 %v6857_v61, 16  ;;  %v6946_v31 = vld [vmem:[%s6607_s8 + $0x38] sm:$0xff]   ;;  %v1742_v42 = vld [vmem:[%s7958_s2 + $0x20] sm:$0xff] }
  0x53   : > { %5580 = vmatprep.mubr.msk.bf16.mxu0 %vm396_vm2, %v1272_v38  ;;  %v1434_v38 = vshll.u32 %v6829_v50, 16  ;;  %4740 = vperm.xlu0 %6295, %v4726_v33   ;;  %v1460_v33 = vrot.slane %v1458_v37, 2  ;;  %v1898_v9 = vshrl.u32 %v6946_v31, 16  ;;  %v4731_v37 = vld [vmem:[%s7958_s2 + $0xe8] sm:$0xff] }
  0x55   : > { %v1436_v48 = vrot.slane %v1434_v38, 3 }
  0x57   : > { %5525 = vmatmul.mubr.msk.bf16.vlgmr.msra.gmra.mrb[0].mxu1 %vm396_vm2, %v607_v51  ;;  %v3234_v51 = vld [vmem:[%s7958_s2 + $0x70] sm:$0xff]  ;;  %v1437_v21 = vor.u32 %v1436_v48, %v1433_v62  ;;  %1767 = vperm.xlu0 %6295, %v1741_v18   ;;  %v4730_v18 = vld [vmem:[%s7958_s2 + $0xe0] sm:$0xff] }
  0x58   : > { %5528 = vmatprep.mubr.msk.bf16.mxu1 %vm396_vm2, %v609_v52  ;;  %5537 = vmatpush3.bf16.msra.mxu1 %v6838_v53  ;;  %v6911_v52 = vld [vmem:[%s6607_s8 + $0x34] sm:$0xf] }
  0x59   : > { %6228 = vmatprep.subr.msk.bf16.mxu1 %vm415_vm0, %v6577_v1  ;;  %3256 = vperm.xlu1 %6296, %v3234_v51   ;;  %v6931_v28 = vcombine.low %v1840_v19, %v6911_v52  ;;  %v1580_v51 = vld [vmem:[%s6607_s8 + $0x10] sm:$0x8] }
  0x5a   : > { %5581 = vmatmul.mubr.msk.bf16.vlgmr.msra.gmra.mrb[0].mxu0 %vm396_vm2, %v1274_v56  ;;  %v1424_v56 = vrot.slane %v1422_v43, 2  ;;  %v1894_v43 = vshll.u32 %v6946_v31, 16  ;;  %v5117_v4 = vcombine.low %v1580_v51, %v6802_v32 }
  0x5b   : > { %5593 = vmatpush3.bf16.msra.mxu0 %v6853_v60  ;;  %5584 = vmatprep.mubr.msk.bf16.mxu0 %vm396_vm2, %v1276_v13  ;;  %v1420_v13 = vsel %vm1403_vm6, %v1411_v10, %v1419_v45  ;;  %v1889_v36 = vshll.u32 %v6931_v28, 16 }
  0x5c   : > { %6227 = vmatprep.subr.msk.bf16.mxu0 %vm415_vm0, %v6862_v63  ;;  %v1454_v63 = vrot.slane %v1452_v15, 3  ;;  %v1896_v48 = vrot.slane %v1894_v43, 1  ;;  %v1906_v15 = vshrl.u32 %v6963_v41, 16  ;;  %v1745_v43 = vld [vmem:[%s7958_s2 + $0x38] sm:$0xff] }
  0x5d   : > { %v1891_v47 = vrot.slane %v1889_v36, 1 }
  0x5e   : > { %v1455_v38 = vor.u32 %v1454_v63, %v1451_v8  ;;  %v1900_v8 = vor.u32 %v1898_v9, %v1896_v48  ;;  %v1594_v9 = vrot.slane %v6847_v57, 3 }
  0x5f   : > { %5529 = vmatmul.mubr.msk.bf16.gmra.mrb[4].mxu1 %vm396_vm2, %v611_v54  ;;  %v1440_v54 = vshrl.u32 %v6847_v57, 16 }
  0x60   : > { %5532 = vmatprep.mubr.msk.bf16.mxu1 %vm396_vm2, %v613_v14  ;;  %v1428_v14 = vor.u32 %v1427_v58, %v1424_v56  ;;  %v1902_v56 = vshll.u32 %v6963_v41, 16  ;;  %v6983_v58 = vld [vmem:[%s6607_s8 + $0x48] sm:$0xff]  }
  0x61   : > { %v1442_v25 = vrot.slane %v1440_v54, 2 }
  0x62   : > { %5585 = vmatmul.mubr.msk.bf16.gmra.mrb[4].mxu0 %vm396_vm2, %v1278_v49  ;;  %v1429_v49 = vsel %vm1403_vm6, %v1419_v45, %v1428_v14  ;;  %v1887_v45 = vshrl.u32 %v6931_v28, 16 }
  0x63   : > { %5588 = vmatprep.mubr.msk.bf16.mxu0 %vm396_vm2, %v1280_v35  ;;  %v6320_v35 = vld [vmem:[%s6607_s8 + $0x38] ss:$0 sps:$4 sm:$0x11]   ;;  %v1446_v10 = vor.u32 %v1445_v29, %v1442_v25  ;;  %v7014_v25 = vld [vmem:[%s6607_s8 + $0x50] sm:$0xff]  }
  0x64   : > { %v789_v19 = vrot.slane %v6320_v35, 1  ;;  %v1892_v62 = vor.u32 %v1891_v47, %v1887_v45  ;;  %v1744_v29 = vld [vmem:[%s7958_s2 + $0x30] sm:$0xff]  ;;  %v7025_v35 = vld [vmem:[%s6607_s8 + $0x58] sm:$0xff]   ;;  %v1922_v45 = vshrl.u32 %v7014_v25, 16 }
  0x65   : > { %v1456_v54 = vsel %vm1403_vm6, %v1446_v10, %v1455_v38  ;;  %v1926_v47 = vshll.u32 %v7025_v35, 16 }
  0x66   : > { %v1897_v32 = vsel %vm343_vm1, %v1892_v62, %v1896_v48 }
  0x67   : > { %5533 = vmatmul.mubr.msk.bf16.gmra.mrb[8].mxu1 %vm396_vm2, %v615_v26  ;;  %v1461_v26 = vshll.u32 %v6934_v34, 16 }
  0x68   : > { %5538 = vmatprep.mubr.msk.bf16.mxu1 %vm396_vm2, %v6754_v20  ;;  %v4727_v20 = vld [vmem:[%s7958_s2 + $0xc8] sm:$0xff] }
  0x69   : > { %4745 = vperm.xlu1 %6296, %v4727_v20   ;;  %v3237_v20 = vld [vmem:[%s7958_s2 + $0x88] sm:$0xff] }
  0x6a   : > { %5589 = vmatmul.mubr.msk.bf16.gmra.mrb[8].mxu0 %vm396_vm2, %v1282_v55  ;;  %v1463_v55 = vrot.slane %v1461_v26, 3 }
  0x6b   : > { %5594 = vmatprep.mubr.msk.bf16.mxu0 %vm396_vm2, %v1420_v13  ;;  %v1743_v13 = vld [vmem:[%s7958_s2 + $0x28] sm:$0xff] }
  0x6d   : > { %3261 = vperm.xlu1 %6296, %v3235_v0   ;;  %v1587_v0 = vrot.slane %v5117_v4, 3  ;;  %v1930_v4 = vshrl.u32 %v7025_v35, 16 }
  0x6f   : > { %5539 = vmatmul.mubr.msk.bf16.vlgmr.msra.gmra.mrb[0].mxu1 %vm396_vm2, %v6771_v17  ;;  %v4728_v17 = vld [vmem:[%s7958_s2 + $0xd0] sm:$0xff]  ;;  %v1589_v36 = vsel %vm1586_vm7, %v1587_v0, %v1588_v59 }
  0x70   : > { %5542 = vmatprep.mubr.msk.bf16.mxu1 %vm396_vm2, %v6776_v22  ;;  %5621 = vmatpush3.bf16.msra.mxu1 %v6588_v3  ;;  %v1438_v22 = vsel %vm1403_vm6, %v1428_v14, %v1437_v21  ;;  %v1464_v14 = vor.u32 %v1463_v55, %v1460_v33  ;;  %v7047_v33 = vld [vmem:[%s6607_s8 + $0x64] sm:$0xf] }
  0x71   : > { %6229 = vmatprep.subr.msk.bf16.mxu1 %vm415_vm0, %v6600_v5  ;;  %4750 = vperm.xlu0 %6295, %v4728_v17   ;;  %v3238_v17 = vld [vmem:[%s7958_s2 + $0x90] sm:$0xff] }
  0x72   : > { %5595 = vmatmul.mubr.msk.bf16.vlgmr.msra.gmra.mrb[0].mxu0 %vm396_vm2, %v1429_v49  ;;  %1772 = vperm.xlu1 %6296, %v1742_v42   ;;  %v1465_v40 = vsel %vm1403_vm6, %v1455_v38, %v1464_v14  ;;  %v1914_v42 = vshrl.u32 %v6983_v58, 16  ;;  %v1592_v38 = vrot.slane %v6829_v50, 3  ;;  %v4732_v50 = vld [vmem:[%s7958_s2 + $0xf0] sm:$0xff]  ;;  %v1596_v14 = vrot.slane %v6857_v61, 3 }
  0x73   : > { %5607 = vmatpush3.bf16.msra.mxu0 %v6943_v24  ;;  %5598 = vmatprep.mubr.msk.bf16.mxu0 %vm396_vm2, %v1438_v22  ;;  %v1918_v22 = vshll.u32 %v7014_v25, 16 }
  0x74   : > { %6237 = vmatprep.subr.msk.bf16.mxu0 %vm415_vm0, %v6577_v1  ;;  %v4729_v1 = vld [vmem:[%s7958_s2 + $0xd8] sm:$0xff]  ;;  %v1595_v0 = vsel %vm1586_vm7, %v1592_v38, %v1594_v9 }
  0x75   : > { %3266 = vperm.xlu0 %6295, %v3236_v44   ;;  %v1590_v44 = vrot.slane %v6824_v46, 3  ;;  %v1920_v51 = vrot.slane %v1918_v22, 1  ;;  %v3239_v46 = vld [vmem:[%s7958_s2 + $0x98] sm:$0xff] }
  0x76   : > { %4755 = vperm.xlu1 %6296, %v4729_v1  }
  0x77   : > { %5543 = vmatmul.mubr.msk.bf16.gmra.mrb[4].mxu1 %vm396_vm2, %v6789_v27  ;;  %v1447_v27 = vsel %vm1403_vm6, %v1437_v21, %v1446_v10  ;;  %v1910_v21 = vshll.u32 %v6983_v58, 16  ;;  %v1924_v1 = vor.u32 %v1922_v45, %v1920_v51  ;;  %v1593_v62 = vsel %vm1586_vm7, %v1590_v44, %v1592_v38  ;;  %v7133_v38 = vld [vmem:[%s6607_s8 + $0x80] sm:$0xff]  }
  0x78   : > { %5546 = vmatprep.mubr.msk.bf16.mxu1 %vm396_vm2, %v6796_v30  ;;  %v790_v30 = vsel %vm602_vm5, %v787_v23, %v789_v19  ;;  %v1904_v23 = vrot.slane %v1902_v56, 1  ;;  %v3334_v19 = vld [vmem:[%s6607_s8 + $0x60] sm:$0xf] }
  0x79   : > { %1777 = vperm.xlu0 %6295, %v1743_v13   ;;  %v1912_v63 = vrot.slane %v1910_v21, 1  ;;  %v7054_v56 = vld [vmem:[%s6607_s8 + $0x60] ss:$0 sps:$4 sm:$0x11]   ;;  %v1591_v13 = vsel %vm1586_vm7, %v1588_v59, %v1590_v44  ;;  %v7065_v48 = vcombine.low %v3334_v19, %v7047_v33  ;;  %v1747_v21 = vld [vmem:[%s7958_s2 + $0x48] sm:$0xff] }
  0x7a   : > { %5599 = vmatmul.mubr.msk.bf16.gmra.mrb[4].mxu0 %vm396_vm2, %v1447_v27  ;;  %3271 = vperm.xlu1 %6296, %v3237_v20   ;;  %v1908_v49 = vor.u32 %v1906_v15, %v1904_v23  ;;  %v1905_v26 = vsel %vm343_vm1, %v1900_v8, %v1904_v23  ;;  %v1928_v27 = vrot.slane %v1926_v47, 1  ;;  %v1746_v20 = vld [vmem:[%s7958_s2 + $0x40] sm:$0xff]  ;;  %v3241_v8 = vld [vmem:[%s7958_s2 + $0xa8] sm:$0xff] }
  0x7b   : > { %5602 = vmatprep.mubr.msk.bf16.mxu0 %vm396_vm2, %v1456_v54  ;;  %v1916_v55 = vor.u32 %v1914_v42, %v1912_v63  ;;  %v3383_v15 = vshll.u32 %v7065_v48, 16  ;;  %v3381_v59 = vshrl.u32 %v7065_v48, 16 }
  0x7c   : > { %v1913_v10 = vsel %vm343_vm1, %v1908_v49, %v1912_v63  ;;  %v1932_v57 = vor.u32 %v1930_v4, %v1928_v27  ;;  %v4734_v49 = vld [vmem:[%s7958_s2 + $0x100] sm:$0xff]  ;;  %v1598_v63 = vrot.slane %v6934_v34, 3  ;;  %v3242_v34 = vld [vmem:[%s7958_s2 + $0xb0] sm:$0xff] }
  0x7d   : > { %4760 = vperm.xlu0 %6295, %v4730_v18   ;;  %v1921_v54 = vsel %vm343_vm1, %v1916_v55, %v1920_v51  ;;  %v1929_v18 = vsel %vm343_vm1, %v1924_v1, %v1928_v27  ;;  %v3385_v23 = vrot.slane %v3383_v15, 1  ;;  %v1749_v51 = vld [vmem:[%s7958_s2 + $0x58] sm:$0xff]  ;;  %v2130_v4 = vld [vmem:[%s6607_s8 + $0x30] sm:$0xe] }
  0x7e   : > { %1782 = vperm.xlu1 %6296, %v1744_v29  }
  0x7f   : > { %5547 = vmatmul.mubr.msk.bf16.gmra.mrb[8].mxu1 %vm396_vm2, %v790_v30  ;;  %v3240_v30 = vld [vmem:[%s7958_s2 + $0xa0] sm:$0xff] }
  0x80   : > { %5622 = vmatprep.mubr.msk.bf16.mxu1 %vm396_vm2, %v1897_v32  ;;  %v7083_v32 = vld [vmem:[%s6607_s8 + $0x68] sm:$0xff]  }
  0x81   : > { %3276 = vperm.xlu0 %6295, %v3238_v17   ;;  %v3388_v29 = vshll.u32 %v7083_v32, 16  ;;  %v3392_v44 = vshrl.u32 %v7083_v32, 16 }
  0x82   : > { %5603 = vmatmul.mubr.msk.bf16.gmra.mrb[8].mxu0 %vm396_vm2, %v1465_v40  ;;  %4765 = vperm.xlu1 %6296, %v4731_v37   ;;  %v7106_v40 = vld [vmem:[%s6607_s8 + $0x70] sm:$0xff]   ;;  %v7114_v37 = vld [vmem:[%s6607_s8 + $0x78] sm:$0xff]  }
  0x83   : > { %5608 = vmatprep.mubr.msk.bf16.mxu0 %vm396_vm2, %v1589_v36  ;;  %v3386_v36 = vor.u32 %v3385_v23, %v3381_v59  ;;  %v3390_v22 = vrot.slane %v3388_v29, 1  ;;  %v3396_v42 = vshll.u32 %v7106_v40, 16  ;;  %v3400_v45 = vshrl.u32 %v7106_v40, 16 }
  0x84   : > { %v3404_v47 = vshll.u32 %v7114_v37, 16  ;;  %v3408_v27 = vshrl.u32 %v7114_v37, 16  ;;  %v2137_v29 = vrot.slane %v6963_v41, 1 }
  0x85   : > { %1787 = vperm.xlu0 %6295, %v1745_v43   ;;  %v1599_v43 = vsel %vm1586_vm7, %v1596_v14, %v1598_v63  ;;  %v3394_v19 = vor.u32 %v3392_v44, %v3390_v22  ;;  %v7198_v63 = vld [vmem:[%s7957_s1 + $0x8] sm:$0x3] }
  0x86   : > { %3281 = vperm.xlu1 %6296, %v3239_v46   ;;  %v3406_v55 = vrot.slane %v3404_v47, 1 }
  0x87   : > { %5623 = vmatmul.mubr.msk.bf16.vlgmr.msra.gmra.mrb[12].mxu1 %vm396_vm2, %v1905_v26  ;;  %v1748_v26 = vld [vmem:[%s7958_s2 + $0x50] sm:$0xff] }
  0x88   : > { %5626 = vmatprep.mubr.msk.bf16.mxu1 %vm396_vm2, %v1913_v10  ;;  %5635 = vmatpush3.bf16.msra.mxu1 %v6625_v12  ;;  %v3391_v10 = vsel %vm343_vm1, %v3386_v36, %v3390_v22  ;;  %v7204_v36 = vld [vmem:[%s6607_s8 + $0x3c] sm:$0xf] }
  0x89   : > { %6230 = vmatprep.subr.msk.bf16.mxu1 %vm415_vm0, %v6661_v39  ;;  %4770 = vperm.xlu0 %6295, %v4732_v50   ;;  %v1934_v39 = vshll.u32 %v7054_v56, 16  ;;  %v7140_v50 = vld [vmem:[%s6607_s8 + $0x88] sm:$0xff]  }
  0x8a   : > { %5609 = vmatmul.mubr.msk.bf16.vlgmr.msra.gmra.mrb[0].mxu0 %vm396_vm2, %v1591_v13  ;;  %1792 = vperm.xlu1 %6296, %v1746_v20   ;;  %v3412_v13 = vshll.u32 %v7133_v38, 16  ;;  %v3416_v20 = vshrl.u32 %v7133_v38, 16 }
  0x8b   : > { %5747 = vmatpush3.bf16.msra.mxu0 %v6588_v3  ;;  %5612 = vmatprep.mubr.msk.bf16.mxu0 %vm396_vm2, %v1593_v62  ;;  %v4733_v3 = vld [vmem:[%s7958_s2 + $0xf8] sm:$0xff]  ;;  %v1936_v61 = vrot.slane %v1934_v39, 1 }
  0x8c   : > { %6238 = vmatprep.subr.msk.bf16.mxu0 %vm415_vm0, %v6600_v5  ;;  %v1597_v5 = vsel %vm1586_vm7, %v1594_v9, %v1596_v14  ;;  %v3414_v39 = vrot.slane %v3412_v13, 1  ;;  %v7160_v9 = vld [vmem:[%s6607_s8 + $0x90] ss:$0 sps:$4 sm:$0x11]   ;;  %v7248_v13 = vld [vmem:[%s6607_s8 + $0x58] sm:$0xff]  }
  0x8d   : > { %3286 = vperm.xlu0 %6295, %v3240_v30   ;;  %v1937_v17 = vsel %vm343_vm1, %v1932_v57, %v1936_v61  ;;  %v3410_v30 = vor.u32 %v3408_v27, %v3406_v55  ;;  %v3633_v27 = vrot.slane %v7114_v37, 1 }
  0x8e   : > { %4775 = vperm.xlu1 %6296, %v4733_v3   ;;  %v3418_v14 = vor.u32 %v3416_v20, %v3414_v39  ;;  %v6375_v3 = vld [vmem:[%s7957_s1 + $0x4] sm:$0x3]  ;;  %v2311_v20 = vrot.slane %v7248_v13, 1 }
  0x8f   : > { %5627 = vmatmul.mubr.msk.bf16.gmra.mrb[16].mxu1 %vm396_vm2, %v1921_v54  ;;  %v3420_v54 = vshll.u32 %v7140_v50, 16  ;;  %v3415_v57 = vsel %vm343_vm1, %v3410_v30, %v3414_v39 }
  0x90   : > { %5630 = vmatprep.mubr.msk.bf16.mxu1 %vm396_vm2, %v1929_v18  ;;  %v5143_v18 = vcombine.low %v2130_v4, %v6911_v52  ;;  %v3428_v52 = vshll.u32 %v7160_v9, 16 }
  0x91   : > { %1797 = vperm.xlu0 %6295, %v1747_v21   ;;  %v3422_v15 = vrot.slane %v3420_v54, 1  ;;  %v2135_v21 = vrot.slane %v6946_v31, 1 }
  0x92   : > { %5613 = vmatmul.mubr.msk.bf16.gmra.mrb[4].mxu0 %vm396_vm2, %v1595_v0  ;;  %3291 = vperm.xlu1 %6296, %v3241_v8   ;;  %v2134_v61 = vrot.slane %v5143_v18, 1  ;;  %v3430_v59 = vrot.slane %v3428_v52, 1  ;;  %v2139_v8 = vrot.slane %v6983_v58, 1 }
  0x93   : > { %5616 = vmatprep.mubr.msk.bf16.mxu0 %vm396_vm2, %v1597_v5  ;;  %v3423_v0 = vsel %vm343_vm1, %v3418_v14, %v3422_v15 }
  0x94   : > { %v2136_v23 = vsel %vm602_vm5, %v2134_v61, %v2135_v21 }
  0x95   : > { %4780 = vperm.xlu0 %6295, %v4734_v49   ;;  %v2140_v49 = vsel %vm602_vm5, %v2137_v29, %v2139_v8 }
  0x96   : > { %1802 = vperm.xlu1 %6296, %v1748_v26   ;;  %v7215_v26 = vld [vmem:[%s6607_s8 + $0x40] sm:$0xff]  }
  0x97   : > { %5631 = vmatmul.mubr.msk.bf16.gmra.mrb[20].mxu1 %vm396_vm2, %v1937_v17  ;;  %v2138_v17 = vsel %vm602_vm5, %v2135_v21, %v2137_v29  ;;  %v2441_v39 = vshrl.u32 %v7215_v26, 16  ;;  %v2444_v30 = vshll.u32 %v7215_v26, 16 }
  0x98   : > { %5636 = vmatprep.mubr.msk.bf16.mxu1 %vm396_vm2, %v6931_v28  ;;  %v3398_v28 = vrot.slane %v3396_v42, 1  ;;  %v3624_v42 = vld [vmem:[%s6607_s8 + $0x60] sm:$0xe] }
  0x99   : > { %3296 = vperm.xlu0 %6295, %v3242_v34   ;;  %v5223_v44 = vcombine.low %v3624_v42, %v7047_v33  ;;  %v2443_v61 = vrot.slane %v2441_v39, 1  ;;  %v2446_v21 = vrot.slane %v2444_v30, 2 }
  0x9a   : > { %5617 = vmatmul.mubr.msk.bf16.gmra.mrb[8].mxu0 %vm396_vm2, %v1599_v43  ;;  %v3402_v46 = vor.u32 %v3400_v45, %v3398_v28  ;;  %v3399_v1 = vsel %vm343_vm1, %v3394_v19, %v3398_v28  ;;  %v2305_v43 = vrot.slane %v7215_v26, 1  ;;  %v3629_v28 = vrot.slane %v7083_v32, 1 }
  0x9b   : > { %5748 = vmatprep.mubr.msk.bf16.mxu0 %vm396_vm2, %v3391_v10  ;;  %v3628_v47 = vrot.slane %v5223_v44, 1 }
  0x9c   : > { %v3407_v62 = vsel %vm343_vm1, %v3402_v46, %v3406_v55  ;;  %v3631_v55 = vrot.slane %v7106_v40, 1 }
  0x9d   : > { %1807 = vperm.xlu0 %6295, %v1749_v51   ;;  %v3630_v19 = vsel %vm602_vm5, %v3628_v47, %v3629_v28  ;;  %v7313_v47 = vld [vmem:[%s6607_s8 + $0x78] sm:$0xff]  }
  0x9e   : > { %v3634_v18 = vsel %vm602_vm5, %v3631_v55, %v3633_v27 }
  0x9f   : > { %5637 = vmatmul.mubr.msk.bf16.vlgmr.msra.gmra.mrb[12].mxu1 %vm396_vm2, %v6946_v31 }
  0xa0   : > { %5640 = vmatprep.mubr.msk.bf16.mxu1 %vm396_vm2, %v6963_v41  ;;  %5649 = vmatpush3.bf16.msra.mxu1 %v6745_v7  ;;  %v2141_v41 = vrot.slane %v7014_v25, 1 }
  0xa1   : > { %6231 = vmatprep.subr.msk.bf16.mxu1 %vm415_vm0, %v6751_v11 }
  0xa2   : > { %5749 = vmatmul.mubr.msk.bf16.vlgmr.msra.gmra.mrb[12].mxu0 %vm396_vm2, %v3399_v1 }
  0xa3   : > { %5761 = vmatpush3.bf16.msra.mxu0 %v6625_v12  ;;  %5752 = vmatprep.mubr.msk.bf16.mxu0 %vm396_vm2, %v3407_v62  ;;  %v3424_v12 = vshrl.u32 %v7140_v50, 16  ;;  %v3632_v62 = vsel %vm602_vm5, %v3629_v28, %v3631_v55 }
  0xa4   : > { %6239 = vmatprep.subr.msk.bf16.mxu0 %vm415_vm0, %v6375_v3 }
  0xa5   : > { %v3426_v5 = vor.u32 %v3424_v12, %v3422_v15  ;;  %v3635_v15 = vrot.slane %v7133_v38, 1  ;;  %v6345_v12 = vld [vmem:[%s6607_s8 + $0x68] ss:$0 sps:$4 sm:$0x11]  }
  0xa7   : > { %5641 = vmatmul.mubr.msk.bf16.gmra.mrb[16].mxu1 %vm396_vm2, %v6983_v58  ;;  %v3431_v31 = vsel %vm343_vm1, %v3426_v5, %v3430_v59  ;;  %v2143_v58 = vrot.slane %v7025_v35, 1  ;;  %v7285_v5 = vld [vmem:[%s6607_s8 + $0x6c] sm:$0xf]  ;;  %v3636_v59 = vsel %vm602_vm5, %v3633_v27, %v3635_v15 }
  0xa8   : > { %5644 = vmatprep.mubr.msk.bf16.mxu1 %vm396_vm2, %v7014_v25  ;;  %v2142_v25 = vsel %vm602_vm5, %v2139_v8, %v2141_v41 }
  0xaa   : > { %5753 = vmatmul.mubr.msk.bf16.gmra.mrb[16].mxu0 %vm396_vm2, %v3415_v57 }
  0xab   : > { %5756 = vmatprep.mubr.msk.bf16.mxu0 %vm396_vm2, %v3423_v0  ;;  %v3637_v0 = vrot.slane %v7140_v50, 1 }
  0xaf   : > { %5645 = vmatmul.mubr.msk.bf16.gmra.mrb[20].mxu1 %vm396_vm2, %v7025_v35  ;;  %v2144_v35 = vsel %vm602_vm5, %v2141_v41, %v2143_v58 }
  0xb0   : > { %5650 = vmatprep.mubr.msk.bf16.mxu1 %vm396_vm2, %v2136_v23 }
  0xb2   : > { %5757 = vmatmul.mubr.msk.bf16.gmra.mrb[20].mxu0 %vm396_vm2, %v3431_v31 }
  0xb3   : > { %5762 = vmatprep.mubr.msk.bf16.mxu0 %vm396_vm2, %v7065_v48  ;;  %v2258_v48 = vld [vmem:[%s6607_s8 + $0x38] sm:$0xe] }
  0xb4   : > { %v5150_v22 = vcombine.low %v2258_v48, %v7204_v36 }
  0xb6   : > { %v2304_v34 = vrot.slane %v5150_v22, 1  ;;  %v2433_v54 = vshrl.u32 %v5150_v22, 16  ;;  %v2436_v4 = vshll.u32 %v5150_v22, 16 }
  0xb7   : > { %5651 = vmatmul.mubr.msk.bf16.vlgmr.msra.gmra.mrb[12].mxu1 %vm396_vm2, %v2138_v17 }
  0xb8   : > { %5654 = vmatprep.mubr.msk.bf16.mxu1 %vm396_vm2, %v2140_v49  ;;  %5663 = vmatpush3.bf16.msra.mxu1 %v6838_v53  ;;  %v2306_v45 = vsel %vm602_vm5, %v2304_v34, %v2305_v43  ;;  %v2435_v57 = vrot.slane %v2433_v54, 1  ;;  %v2438_v52 = vrot.slane %v2436_v4, 2  ;;  %v3638_v49 = vsel %vm602_vm5, %v3635_v15, %v3637_v0 }
  0xb9   : > { %6232 = vmatprep.subr.msk.bf16.mxu1 %vm415_vm0, %v7198_v63 }
  0xba   : > { %5763 = vmatmul.mubr.msk.bf16.vlgmr.msra.gmra.mrb[12].mxu0 %vm396_vm2, %v7083_v32  ;;  %v7251_v32 = vld [vmem:[%s6607_s8 + $0x60] sm:$0xff]   ;;  %v2439_v31 = vor.u32 %v2438_v52, %v2435_v57  ;;  %v7340_v57 = vld [vmem:[%s6607_s8 + $0x90] sm:$0xff]   ;;  %v7345_v52 = vld [vmem:[%s7957_s1 + $0xc] sm:$0x3] }
  0xbb   : > { %5775 = vmatpush3.bf16.msra.mxu0 %v6745_v7  ;;  %5766 = vmatprep.mubr.msk.bf16.mxu0 %vm396_vm2, %v7106_v40  ;;  %v2145_v7 = vrot.slane %v7054_v56, 1  ;;  %v7235_v56 = vld [vmem:[%s6607_s8 + $0x50] sm:$0xff]   ;;  %v2313_v40 = vrot.slane %v7251_v32, 1 }
  0xbc   : > { %6240 = vmatprep.subr.msk.bf16.mxu0 %vm415_vm0, %v6751_v11  ;;  %v7229_v11 = vld [vmem:[%s6607_s8 + $0x48] sm:$0xff]   ;;  %v2309_v51 = vrot.slane %v7235_v56, 1  ;;  %v2459_v8 = vshrl.u32 %v7235_v56, 16  ;;  %v2462_v17 = vshll.u32 %v7235_v56, 16 }
  0xbd   : > { %v2146_v10 = vsel %vm602_vm5, %v2143_v58, %v2145_v7  ;;  %v2307_v33 = vrot.slane %v7229_v11, 1  ;;  %v2314_v3 = vsel %vm602_vm5, %v2311_v20, %v2313_v40  ;;  %v2450_v23 = vshrl.u32 %v7229_v11, 16  ;;  %v7298_v58 = vld [vmem:[%s6607_s8 + $0x70] sm:$0xff]  }
  0xbe   : > { %v2312_v14 = vsel %vm602_vm5, %v2309_v51, %v2311_v20  ;;  %v2453_v29 = vshll.u32 %v7229_v11, 16  ;;  %v2461_v42 = vrot.slane %v2459_v8, 1  ;;  %v2464_v7 = vrot.slane %v2462_v17, 2 }
  0xbf   : > { %5655 = vmatmul.mubr.msk.bf16.gmra.mrb[16].mxu1 %vm396_vm2, %v2142_v25  ;;  %v2308_v46 = vsel %vm602_vm5, %v2305_v43, %v2307_v33  ;;  %v2310_v1 = vsel %vm602_vm5, %v2307_v33, %v2309_v51  ;;  %v2452_v48 = vrot.slane %v2450_v23, 1  ;;  %v3799_v43 = vrot.slane %v7298_v58, 1 }
  0xc0   : > { %5658 = vmatprep.mubr.msk.bf16.mxu1 %vm396_vm2, %v2144_v35  ;;  %v2455_v25 = vrot.slane %v2453_v29, 2  ;;  %v3639_v35 = vrot.slane %v7160_v9, 1  ;;  %v2465_v28 = vor.u32 %v2464_v7, %v2461_v42  ;;  %v2477_v33 = vshrl.u32 %v7251_v32, 16 }
  0xc1   : > { %v2480_v51 = vshll.u32 %v7251_v32, 16  ;;  %v3801_v20 = vrot.slane %v7313_v47, 1  ;;  %v3807_v29 = vrot.slane %v7340_v57, 1  ;;  %v3935_v17 = vshrl.u32 %v7298_v58, 16 }
  0xc2   : > { %5767 = vmatmul.mubr.msk.bf16.gmra.mrb[16].mxu0 %vm396_vm2, %v7114_v37  ;;  %v7267_v37 = vld [vmem:[%s7957_s1 + $0xa] sm:$0x3]  ;;  %v2456_v44 = vor.u32 %v2455_v25, %v2452_v48  ;;  %v3640_v9 = vsel %vm602_vm5, %v3637_v0, %v3639_v35  ;;  %v2479_v54 = vrot.slane %v2477_v33, 1  ;;  %v6353_v48 = vld [vmem:[%s6607_s8 + $0x98] ss:$0 sps:$4 sm:$0x11]  }
  0xc3   : > { %5770 = vmatprep.mubr.msk.bf16.mxu0 %vm396_vm2, %v7133_v38  ;;  %v3752_v38 = vld [vmem:[%s6607_s8 + $0x68] sm:$0xe]  ;;  %v2482_v4 = vrot.slane %v2480_v51, 2  ;;  %v3802_v15 = vsel %vm602_vm5, %v3799_v43, %v3801_v20  ;;  %v3937_v42 = vrot.slane %v3935_v17, 1  ;;  %v2612_v33 = vrot.slane %v7229_v11, 2 }
  0xc4   : > { %v7295_v41 = vcombine.low %v3752_v38, %v7285_v5 }
  0xc6   : > { %v3798_v34 = vrot.slane %v7295_v41, 1  ;;  %v3930_v8 = vshll.u32 %v7295_v41, 16 }
  0xc7   : > { %5659 = vmatmul.mubr.msk.bf16.gmra.mrb[20].mxu1 %vm396_vm2, %v2146_v10  ;;  %v2468_v10 = vshrl.u32 %v7248_v13, 16 }
  0xc8   : > { %5664 = vmatprep.mubr.msk.bf16.mxu1 %vm396_vm2, %v2306_v45  ;;  %v2471_v45 = vshll.u32 %v7248_v13, 16 }
  0xca   : > { %5771 = vmatmul.mubr.msk.bf16.gmra.mrb[20].mxu0 %vm396_vm2, %v7140_v50  ;;  %v2447_v50 = vor.u32 %v2446_v21, %v2443_v61  ;;  %v2473_v27 = vrot.slane %v2471_v45, 2  ;;  %v2605_v21 = vld [vmem:[%s6607_s8 + $0x38] sm:$0xc] }
  0xcb   : > { %5776 = vmatprep.mubr.msk.bf16.mxu0 %vm396_vm2, %v3630_v19  ;;  %v3800_v19 = vsel %vm602_vm5, %v3798_v34, %v3799_v43  ;;  %v3809_v34 = vrot.slane %v6353_v48, 1  ;;  %v4099_v48 = vld [vmem:[%s6607_s8 + $0x68] sm:$0xc] }
  0xcc   : > { %v2448_v22 = vsel %vm911_vm3, %v2439_v31, %v2447_v50  ;;  %v2457_v55 = vsel %vm911_vm3, %v2447_v50, %v2456_v44  ;;  %v5170_v31 = vcombine.low %v2605_v21, %v7204_v36  ;;  %v3927_v50 = vshrl.u32 %v7295_v41, 16 }
  0xcd   : > { %v2610_v41 = vrot.slane %v7215_v26, 2  ;;  %v3810_v51 = vsel %vm602_vm5, %v3807_v29, %v3809_v34  ;;  %v3243_v34 = vld [vmem:[%s7958_s2 + $0xb8] sm:$0xff] }
  0xce   : > { %v2609_v25 = vrot.slane %v5170_v31, 2  ;;  %v3929_v35 = vrot.slane %v3927_v50, 1  ;;  %v7412_v31 = vld [vmem:[%s6607_s8 + $0x44] sm:$0xf] }
  0xcf   : > { %5665 = vmatmul.mubr.msk.bf16.vlgmr.msra.gmra.mrb[12].mxu1 %vm396_vm2, %v2308_v46  ;;  %v7319_v46 = vld [vmem:[%s6607_s8 + $0x80] sm:$0xff]  }
  0xd0   : > { %5668 = vmatprep.mubr.msk.bf16.mxu1 %vm396_vm2, %v2310_v1  ;;  %5677 = vmatpush3.bf16.msra.mxu1 %v6584_v2  ;;  %v2470_v1 = vrot.slane %v2468_v10, 1  ;;  %v3803_v39 = vrot.slane %v7319_v46, 1  ;;  %v2611_v43 = vsel %vm1094_vm4, %v2609_v25, %v2610_v41  ;;  %v3947_v10 = vshll.u32 %v7313_v47, 16 }
  0xd1   : > { %6233 = vmatprep.subr.msk.bf16.mxu1 %vm415_vm0, %v7267_v37  ;;  %v3953_v26 = vshrl.u32 %v7319_v46, 16 }
  0xd2   : > { %5777 = vmatmul.mubr.msk.bf16.vlgmr.msra.gmra.mrb[12].mxu0 %vm396_vm2, %v3632_v62  ;;  %v7324_v62 = vld [vmem:[%s6607_s8 + $0x68] ss:$0 sps:$4 sm:$0x33]   ;;  %v2474_v30 = vor.u32 %v2473_v27, %v2470_v1  ;;  %v3804_v61 = vsel %vm602_vm5, %v3801_v20, %v3803_v39  ;;  %v2614_v1 = vrot.slane %v7235_v56, 2  ;;  %v3971_v56 = vshrl.u32 %v7340_v57, 16 }
  0xd3   : > { %5789 = vmatpush3.bf16.msra.mxu0 %v6838_v53  ;;  %5780 = vmatprep.mubr.msk.bf16.mxu0 %vm396_vm2, %v3634_v18  ;;  %v2315_v53 = vrot.slane %v6345_v12, 1  ;;  %v2486_v18 = vshrl.u32 %v7324_v62, 16  ;;  %v2483_v12 = vor.u32 %v2482_v4, %v2479_v54  ;;  %v3955_v20 = vrot.slane %v3953_v26, 1 }
  0xd4   : > { %6241 = vmatprep.subr.msk.bf16.mxu0 %vm415_vm0, %v7198_v63  ;;  %v2475_v0 = vsel %vm911_vm3, %v2465_v28, %v2474_v30  ;;  %v2613_v54 = vsel %vm1094_vm4, %v2610_v41, %v2612_v33  ;;  %v2620_v41 = vrot.slane %v7324_v62, 2 }
  0xd5   : > { %v2316_v63 = vsel %vm602_vm5, %v2313_v40, %v2315_v53  ;;  %v2466_v40 = vsel %vm911_vm3, %v2456_v44, %v2465_v28  ;;  %v2488_v38 = vrot.slane %v2486_v18, 1  ;;  %v2484_v23 = vsel %vm911_vm3, %v2474_v30, %v2483_v12 }
  0xd6   : > { %v3944_v44 = vshrl.u32 %v7313_v47, 16  ;;  %v3956_v28 = vshll.u32 %v7319_v46, 16  ;;  %v2615_v30 = vsel %vm1094_vm4, %v2612_v33, %v2614_v1 }
  0xd7   : > { %5669 = vmatmul.mubr.msk.bf16.gmra.mrb[16].mxu1 %vm396_vm2, %v2312_v14  ;;  %v2489_v14 = vshll.u32 %v7324_v62, 16  ;;  %v4736_v62 = vld [vmem:[%s7958_s2 + $0x110] sm:$0xff] }
  0xd8   : > { %5672 = vmatprep.mubr.msk.bf16.mxu1 %vm396_vm2, %v2314_v3  ;;  %v7337_v3 = vld [vmem:[%s6607_s8 + $0x88] sm:$0xff]   ;;  %4790 = vperm.xlu0 %6295, %v4736_v62  }
  0xd9   : > { %v3805_v53 = vrot.slane %v7337_v3, 1  ;;  %v3962_v4 = vshrl.u32 %v7337_v3, 16 }
  0xda   : > { %5781 = vmatmul.mubr.msk.bf16.gmra.mrb[16].mxu0 %vm396_vm2, %v3636_v59  ;;  %v2491_v59 = vrot.slane %v2489_v14, 2  ;;  %v3974_v14 = vshll.u32 %v7340_v57, 16 }
  0xdb   : > { %5784 = vmatprep.mubr.msk.bf16.mxu0 %vm396_vm2, %v3638_v49  ;;  %v3938_v49 = vshll.u32 %v7298_v58, 16  ;;  %v3808_v36 = vsel %vm602_vm5, %v3805_v53, %v3807_v29  ;;  %v2733_v29 = vld [vmem:[%s6607_s8 + $0x40] sm:$0xc] }
  0xdd   : > { %v3940_v7 = vrot.slane %v3938_v49, 2 }
  0xdf   : > { %5673 = vmatmul.mubr.msk.bf16.gmra.mrb[20].mxu1 %vm396_vm2, %v2316_v63  ;;  %v3806_v63 = vsel %vm602_vm5, %v3803_v39, %v3805_v53  ;;  %v3965_v39 = vshll.u32 %v7337_v3, 16  ;;  %v3973_v53 = vrot.slane %v3971_v56, 1  ;;  %v7492_v56 = vld [vmem:[%s7957_s1 + $0x10] sm:$0x3] }
  0xe0   : > { %5678 = vmatprep.mubr.msk.bf16.mxu1 %vm396_vm2, %v2448_v22  ;;  %v3932_v22 = vrot.slane %v3930_v8, 2 }
  0xe2   : > { %5785 = vmatmul.mubr.msk.bf16.gmra.mrb[20].mxu0 %vm396_vm2, %v3640_v9  ;;  %v3933_v45 = vor.u32 %v3932_v22, %v3929_v35  ;;  %v3941_v9 = vor.u32 %v3940_v7, %v3937_v42 }
  0xe3   : > { %5790 = vmatprep.mubr.msk.bf16.mxu0 %vm396_vm2, %v3800_v19  ;;  %v3946_v19 = vrot.slane %v3944_v44, 1  ;;  %v7450_v44 = vld [vmem:[%s6607_s8 + $0x50] sm:$0xff]  }
  0xe4   : > { %v3942_v27 = vsel %vm911_vm3, %v3933_v45, %v3941_v9  ;;  %v2782_v33 = vrot.slane %v7450_v44, 2 }
  0xe7   : > { %5679 = vmatmul.mubr.msk.bf16.vlgmr.msra.gmra.mrb[12].mxu1 %vm396_vm2, %v2457_v55  ;;  %v3949_v55 = vrot.slane %v3947_v10, 2 }
  0xe8   : > { %5682 = vmatprep.mubr.msk.bf16.mxu1 %vm396_vm2, %v2466_v40  ;;  %5691 = vmatpush3.bf16.msra.mxu1 %v6610_v6  ;;  %v3958_v40 = vrot.slane %v3956_v28, 2  ;;  %v4104_v28 = vrot.slane %v7298_v58, 2  ;;  %v7471_v58 = vld [vmem:[%s6607_s8 + $0x60] sm:$0xff]  }
  0xe9   : > { %6234 = vmatprep.subr.msk.bf16.mxu1 %vm415_vm0, %v7345_v52  ;;  %v3950_v11 = vor.u32 %v3949_v55, %v3946_v19 }
  0xea   : > { %5791 = vmatmul.mubr.msk.bf16.vlgmr.msra.gmra.mrb[12].mxu0 %vm396_vm2, %v3802_v15  ;;  %v3959_v18 = vor.u32 %v3958_v40, %v3955_v20  ;;  %v2616_v15 = vrot.slane %v7248_v13, 2  ;;  %v7474_v20 = vld [vmem:[%s6607_s8 + $0x68] sm:$0xff]  }
  0xeb   : > { %5803 = vmatpush3.bf16.msra.mxu0 %v6584_v2  ;;  %5794 = vmatprep.mubr.msk.bf16.mxu0 %vm396_vm2, %v3804_v61  ;;  %v2492_v2 = vor.u32 %v2491_v59, %v2488_v38  ;;  %v3967_v61 = vrot.slane %v3965_v39, 2  ;;  %v3951_v21 = vsel %vm911_vm3, %v3941_v9, %v3950_v11  ;;  %v7400_v38 = vld [vmem:[%s6607_s8 + $0x98] ss:$0 sps:$4 sm:$0x33]   ;;  %v7405_v59 = vld [vmem:[%s7957_s1 + $0xe] sm:$0x3] }
  0xec   : > { %6242 = vmatprep.subr.msk.bf16.mxu0 %vm415_vm0, %v7267_v37  ;;  %v3960_v13 = vsel %vm911_vm3, %v3950_v11, %v3959_v18  ;;  %v3980_v17 = vshrl.u32 %v7400_v38, 16  ;;  %v3983_v49 = vshll.u32 %v7400_v38, 16  ;;  %v7458_v9 = vld [vmem:[%s6607_s8 + $0x58] sm:$0xff]   ;;  %v2786_v39 = vrot.slane %v7471_v58, 2 }
  0xed   : > { %v2493_v37 = vsel %vm911_vm3, %v2483_v12, %v2492_v2  ;;  %v3964_v12 = vrot.slane %v3962_v4, 1  ;;  %v7422_v2 = vcombine.low %v2733_v29, %v7412_v31  ;;  %v2784_v19 = vrot.slane %v7458_v9, 2 }
  0xee   : > { %v3982_v35 = vrot.slane %v3980_v17, 1  ;;  %v3985_v22 = vrot.slane %v3983_v49, 2  ;;  %v2925_v17 = vshrl.u32 %v7450_v44, 16  ;;  %v2928_v49 = vshll.u32 %v7450_v44, 16 }
  0xef   : > { %5683 = vmatmul.mubr.msk.bf16.gmra.mrb[16].mxu1 %vm396_vm2, %v2475_v0  ;;  %v2618_v0 = vrot.slane %v7251_v32, 2  ;;  %v2617_v32 = vsel %vm1094_vm4, %v2614_v1, %v2616_v15  ;;  %v3968_v50 = vor.u32 %v3967_v61, %v3964_v12  ;;  %v2785_v40 = vsel %vm1094_vm4, %v2782_v33, %v2784_v19 }
  0xf0   : > { %5686 = vmatprep.mubr.msk.bf16.mxu1 %vm396_vm2, %v2484_v23  ;;  %v3976_v23 = vrot.slane %v3974_v14, 2  ;;  %v3986_v10 = vor.u32 %v3985_v22, %v3982_v35  ;;  %v2908_v11 = vshrl.u32 %v7422_v2, 16  ;;  %v2787_v12 = vsel %vm1094_vm4, %v2784_v19, %v2786_v39 }
  0xf1   : > { %v2619_v8 = vsel %vm1094_vm4, %v2616_v15, %v2618_v0  ;;  %v3969_v25 = vsel %vm911_vm3, %v3959_v18, %v3968_v50  ;;  %v7497_v15 = vpop.permute.xlu0 %1752  ;;  %v4110_v61 = vrot.slane %v7337_v3, 2  ;;  %v4227_v3 = vld [vmem:[%s6607_s8 + $0x70] sm:$0xc]  ;;  %v2927_v22 = vrot.slane %v2925_v17, 2 }
  0xf2   : > { %5795 = vmatmul.mubr.msk.bf16.gmra.mrb[16].mxu0 %vm396_vm2, %v3806_v63  ;;  %v7425_v63 = vld [vmem:[%s6607_s8 + $0x48] sm:$0xff]   ;;  %v2952_v19 = vshrl.u32 %v7474_v20, 16 }
  0xf3   : > { %5798 = vmatprep.mubr.msk.bf16.mxu0 %vm396_vm2, %v3808_v36  ;;  %v3977_v36 = vor.u32 %v3976_v23, %v3973_v53  ;;  %v2780_v42 = vrot.slane %v7425_v63, 2  ;;  %v2916_v18 = vshrl.u32 %v7425_v63, 16 }
  0xf5   : > { %v3978_v7 = vsel %vm911_vm3, %v3968_v50, %v3977_v36  ;;  %v2783_v1 = vsel %vm1094_vm4, %v2780_v42, %v2782_v33  ;;  %v2918_v23 = vrot.slane %v2916_v18, 2  ;;  %v7512_v50 = vld [vmem:[%s6607_s8 + $0x74] sm:$0xf]  ;;  %v7546_v33 = vld [vmem:[%s6607_s8 + $0x80] sm:$0xff]  }
  0xf7   : > { %5687 = vmatmul.mubr.msk.bf16.gmra.mrb[20].mxu1 %vm396_vm2, %v2493_v37  ;;  %v5250_v37 = vcombine.low %v4099_v48, %v7285_v5  ;;  %v4737_v5 = vld [vmem:[%s7958_s2 + $0x118] sm:$0xff] }
  0xf8   : > { %5692 = vmatprep.mubr.msk.bf16.mxu1 %vm396_vm2, %v2611_v43  ;;  %v2621_v43 = vsel %vm1094_vm4, %v2618_v0, %v2620_v41  ;;  %v6363_v0 = vld [vmem:[%s6607_s8 + $0x70] ss:$0 sps:$4 sm:$0x33]   ;;  %v7527_v41 = vld [vmem:[%s6607_s8 + $0x78] sm:$0xff]  }
  0xf9   : > { %v4103_v26 = vrot.slane %v5250_v37, 2 }
  0xfa   : > { %5799 = vmatmul.mubr.msk.bf16.gmra.mrb[20].mxu0 %vm396_vm2, %v3810_v51  ;;  %v3987_v51 = vsel %vm911_vm3, %v3977_v36, %v3986_v10 }
  0xfb   : > { %5804 = vmatprep.mubr.msk.bf16.mxu0 %vm396_vm2, %v3942_v27  ;;  %v4105_v55 = vsel %vm1094_vm4, %v4103_v26, %v4104_v28  ;;  %v4106_v27 = vrot.slane %v7313_v47, 2  ;;  %v2788_v47 = vrot.slane %v7474_v20, 2  ;;  %v2943_v26 = vshrl.u32 %v7471_v58, 16 }
  0xfd   : > { %v4107_v4 = vsel %vm1094_vm4, %v4104_v28, %v4106_v27 }
  0xff   : > { %5693 = vmatmul.mubr.msk.bf16.vlgmr.msra.gmra.mrb[12].mxu1 %vm396_vm2, %v2613_v54  ;;  %v4108_v54 = vrot.slane %v7319_v46, 2  ;;  %v2919_v46 = vshll.u32 %v7425_v63, 16 }
 0x100   : > { %5696 = vmatprep.mubr.msk.bf16.mxu1 %vm396_vm2, %v2615_v30  ;;  %5705 = vmatpush3.bf16.msra.mxu1 %v6766_v16  ;;  %v2911_v30 = vshll.u32 %v7422_v2, 16 }
 0x101   : > { %6235 = vmatprep.subr.msk.bf16.mxu1 %vm415_vm0, %v7405_v59  ;;  %v4109_v14 = vsel %vm1094_vm4, %v4106_v27, %v4108_v54  ;;  %v2921_v29 = vrot.slane %v2919_v46, 3  ;;  %v7552_v27 = vld [vmem:[%s6607_s8 + $0x88] sm:$0xff]   ;;  %v2954_v46 = vrot.slane %v2952_v19, 2 }
 0x102   : > { %5805 = vmatmul.mubr.msk.bf16.vlgmr.msra.gmra.mrb[12].mxu0 %vm396_vm2, %v3951_v21  ;;  %v2789_v21 = vsel %vm1094_vm4, %v2786_v39, %v2788_v47  ;;  %v2913_v53 = vrot.slane %v2911_v30, 3  ;;  %v4276_v30 = vrot.slane %v7546_v33, 2 }
 0x103   : > { %5817 = vmatpush3.bf16.msra.mxu0 %v6610_v6  ;;  %5808 = vmatprep.mubr.msk.bf16.mxu0 %vm396_vm2, %v3960_v13  ;;  %v4735_v6 = vld [vmem:[%s7958_s2 + $0x108] sm:$0xff]  ;;  %v2910_v13 = vrot.slane %v2908_v11, 2  ;;  %v2922_v36 = vor.u32 %v2921_v29, %v2918_v23  ;;  %v7561_v11 = vld [vmem:[%s6607_s8 + $0x70] ss:$0 sps:$4 sm:$0x77]  }
 0x104   : > { %6243 = vmatprep.subr.msk.bf16.mxu0 %vm415_vm0, %v7345_v52  ;;  %4785 = vperm.xlu1 %6296, %v4735_v6   ;;  %v2779_v52 = vrot.slane %v7422_v2, 2  ;;  %v7518_v2 = vpop.permute.xlu0 %1757  ;;  %v2937_v6 = vshll.u32 %v7458_v9, 16  ;;  %v7576_v23 = vld [vmem:[%s6607_s8 + $0x90] sm:$0xff]  }
 0x106   : > { %v2781_v45 = vsel %vm1094_vm4, %v2779_v52, %v2780_v42  ;;  %v2930_v52 = vrot.slane %v2928_v49, 3  ;;  %v7531_v42 = vpop.permute.xlu1 %3246  ;;  %v2939_v62 = vrot.slane %v2937_v6, 3 }
 0x107   : > { %5697 = vmatmul.mubr.msk.bf16.gmra.mrb[16].mxu1 %vm396_vm2, %v2617_v32  ;;  %v4112_v32 = vrot.slane %v7340_v57, 2  ;;  %v2914_v57 = vor.u32 %v2913_v53, %v2910_v13 }
 0x108   : > { %5700 = vmatprep.mubr.msk.bf16.mxu1 %vm396_vm2, %v2619_v8  ;;  %3301 = vperm.xlu1 %6296, %v3243_v34   ;;  %v4111_v8 = vsel %vm1094_vm4, %v4108_v54, %v4110_v61  ;;  %v7538_v10 = vpop.permute.xlu0 %1762 }
 0x109   : > { %v4113_v48 = vsel %vm1094_vm4, %v4110_v61, %v4112_v32  ;;  %v2923_v37 = vsel %vm1403_vm6, %v2914_v57, %v2922_v36 }
 0x10a   : > { %5809 = vmatmul.mubr.msk.bf16.gmra.mrb[16].mxu0 %vm396_vm2, %v3969_v25  ;;  %v7524_v25 = vcombine.low %v4227_v3, %v7512_v50 }
 0x10b   : > { %5812 = vmatprep.mubr.msk.bf16.mxu0 %vm396_vm2, %v3978_v7  ;;  %v4114_v7 = vrot.slane %v7400_v38, 2  ;;  %v2946_v38 = vshll.u32 %v7471_v58, 16 }
 0x10c   : > { %4795 = vperm.xlu1 %6296, %v4737_v5   ;;  %v4274_v5 = vrot.slane %v7527_v41, 2 }
 0x10d   : > { %v4115_v28 = vsel %vm1094_vm4, %v4112_v32, %v4114_v7  ;;  %v2948_v39 = vrot.slane %v2946_v38, 3  ;;  %v7579_v32 = vld [vmem:[%s6607_s8 + $0x98] sm:$0xff]   ;;  %v4410_v7 = vshrl.u32 %v7527_v41, 16 }
 0x10e   : > { %v4277_v53 = vsel %vm1094_vm4, %v4274_v5, %v4276_v30  ;;  %v4282_v6 = vrot.slane %v7579_v32, 2 }
 0x10f   : > { %5701 = vmatmul.mubr.msk.bf16.gmra.mrb[20].mxu1 %vm396_vm2, %v2621_v43  ;;  %v4273_v43 = vrot.slane %v7524_v25, 2  ;;  %v4412_v38 = vrot.slane %v4410_v7, 2  ;;  %v4449_v7 = vshll.u32 %v7579_v32, 16 }
 0x110   : > { %5706 = vmatprep.mubr.msk.bf16.mxu1 %vm396_vm2, %v2781_v45  ;;  %v2931_v45 = vor.u32 %v2930_v52, %v2927_v22  ;;  %v4402_v22 = vshrl.u32 %v7524_v25, 16  ;;  %v4405_v52 = vshll.u32 %v7524_v25, 16 }
 0x112   : > { %5813 = vmatmul.mubr.msk.bf16.gmra.mrb[20].mxu0 %vm396_vm2, %v3987_v51  ;;  %v2932_v54 = vsel %vm1403_vm6, %v2922_v36, %v2931_v45  ;;  %v4280_v36 = vrot.slane %v7576_v23, 2 }
 0x113   : > { %5818 = vmatprep.mubr.msk.bf16.mxu0 %vm396_vm2, %v4105_v55  ;;  %v2955_v55 = vshll.u32 %v7474_v20, 16 }
 0x117   : > { %5707 = vmatmul.mubr.msk.bf16.vlgmr.msra.gmra.mrb[12].mxu1 %vm396_vm2, %v2783_v1  ;;  %v4275_v1 = vsel %vm1094_vm4, %v4273_v43, %v4274_v5  ;;  %v6371_v43 = vld [vmem:[%s6607_s8 + $0xa0] ss:$0 sps:$4 sm:$0x33]   ;;  %v3085_v5 = vrot.slane %v7425_v63, 3 }
 0x118   : > { %5710 = vmatprep.mubr.msk.bf16.mxu1 %vm396_vm2, %v2785_v40  ;;  %5719 = vmatpush3.bf16.msra.mxu1 %v6853_v60  ;;  %v7554_v40 = vpop.permute.xlu1 %3251  ;;  %v4284_v19 = vrot.slane %v6371_v43, 2 }
 0x119   : > { %6236 = vmatprep.subr.msk.bf16.mxu1 %vm415_vm0, %v7492_v56 }
 0x11a   : > { %5819 = vmatmul.mubr.msk.bf16.vlgmr.msra.gmra.mrb[12].mxu0 %vm396_vm2, %v4107_v4  ;;  %v2945_v4 = vrot.slane %v2943_v26, 2  ;;  %v4407_v26 = vrot.slane %v4405_v52, 3  ;;  %v4446_v52 = vshrl.u32 %v7579_v32, 16 }
 0x11b   : > { %5831 = vmatpush3.bf16.msra.mxu0 %v6766_v16  ;;  %5822 = vmatprep.mubr.msk.bf16.mxu0 %vm396_vm2, %v4109_v14  ;;  %v2790_v16 = vrot.slane %v6363_v0, 2  ;;  %v2957_v14 = vrot.slane %v2955_v55, 3  ;;  %v2964_v0 = vshll.u32 %v7561_v11, 16 }
 0x11c   : > { %6244 = vmatprep.subr.msk.bf16.mxu0 %vm415_vm0, %v7405_v59  ;;  %v2934_v59 = vshrl.u32 %v7458_v9, 16  ;;  %v2949_v61 = vor.u32 %v2948_v39, %v2945_v4  ;;  %v7571_v13 = vpop.permute.xlu1 %3256 }
 0x11d   : > { %v2791_v35 = vsel %vm1094_vm4, %v2788_v47, %v2790_v16  ;;  %v7558_v47 = vpop.permute.xlu0 %4740  ;;  %v2958_v29 = vor.u32 %v2957_v14, %v2954_v46  ;;  %v3080_v16 = vld [vmem:[%s6607_s8 + $0x40] sm:$0x8]  ;;  %v2966_v57 = vrot.slane %v2964_v0, 3  ;;  %v3087_v46 = vrot.slane %v7450_v44, 3 }
 0x11e   : > { %v2936_v34 = vrot.slane %v2934_v59, 2  ;;  %v4285_v14 = vsel %vm1094_vm4, %v4282_v6, %v4284_v19 }
 0x11f   : > { %5711 = vmatmul.mubr.msk.bf16.gmra.mrb[16].mxu1 %vm396_vm2, %v2787_v12  ;;  %v4278_v12 = vrot.slane %v7552_v27, 2  ;;  %v2959_v59 = vsel %vm1403_vm6, %v2949_v61, %v2958_v29  ;;  %v3088_v44 = vsel %vm1586_vm7, %v3085_v5, %v3087_v46 }
 0x120   : > { %5714 = vmatprep.mubr.msk.bf16.mxu1 %vm396_vm2, %v2789_v21  ;;  %v2940_v51 = vor.u32 %v2939_v62, %v2936_v34  ;;  %v2961_v21 = vshrl.u32 %v7561_v11, 16  ;;  %v4283_v62 = vsel %vm1094_vm4, %v4280_v36, %v4282_v6  ;;  %v4437_v6 = vshrl.u32 %v7576_v23, 16 }
 0x121   : > { %v4279_v3 = vsel %vm1094_vm4, %v4276_v30, %v4278_v12  ;;  %v4428_v30 = vshrl.u32 %v7552_v27, 16 }
 0x122   : > { %5823 = vmatmul.mubr.msk.bf16.gmra.mrb[16].mxu0 %vm396_vm2, %v4111_v8  ;;  %v2941_v18 = vsel %vm1403_vm6, %v2931_v45, %v2940_v51  ;;  %v7582_v8 = vpop.permute.xlu0 %1767  ;;  %v2950_v17 = vsel %vm1403_vm6, %v2940_v51, %v2949_v61  ;;  %v2963_v49 = vrot.slane %v2961_v21, 2  ;;  %v4404_v45 = vrot.slane %v4402_v22, 2 }
 0x123   : > { %5826 = vmatprep.mubr.msk.bf16.mxu0 %vm396_vm2, %v4113_v48  ;;  %v5197_v48 = vcombine.low %v3080_v16, %v7412_v31  ;;  %v4281_v31 = vsel %vm1094_vm4, %v4278_v12, %v4280_v36  ;;  %v3089_v21 = vrot.slane %v7458_v9, 3 }
 0x124   : > { %v4408_v63 = vor.u32 %v4407_v26, %v4404_v45 }
 0x125   : > { %v3084_v25 = vrot.slane %v5197_v48, 3  ;;  %v4440_v48 = vshll.u32 %v7576_v23, 16 }
 0x126   : > { %v7603_v34 = vpop.permute.xlu0 %4750 }
 0x127   : > { %5715 = vmatmul.mubr.msk.bf16.gmra.mrb[20].mxu1 %vm396_vm2, %v2791_v35  ;;  %v7593_v35 = vpop.permute.xlu1 %4745  ;;  %v3086_v55 = vsel %vm1586_vm7, %v3084_v25, %v3085_v5  ;;  %v4442_v43 = vrot.slane %v4440_v48, 3  ;;  %v3093_v25 = vrot.slane %v7474_v20, 3  ;;  %v7655_v5 = vld [vmem:[%s6607_s8 + $0xa0] ss:$0 sps:$4 sm:$0x77]  }
 0x128   : > { %5720 = vmatprep.mubr.msk.bf16.mxu1 %vm396_vm2, %v2923_v37  ;;  %v2967_v37 = vor.u32 %v2966_v57, %v2963_v49 }
 0x12a   : > { %5827 = vmatmul.mubr.msk.bf16.gmra.mrb[20].mxu0 %vm396_vm2, %v4115_v28  ;;  %v7617_v39 = vpop.permute.xlu0 %3266 }
 0x12b   : > { %5832 = vmatprep.mubr.msk.bf16.mxu0 %vm396_vm2, %v4275_v1  ;;  %v7611_v51 = vpop.permute.xlu1 %3261  ;;  %v4419_v1 = vshrl.u32 %v7546_v33, 16 }
 0x12d   : > { %v4421_v12 = vrot.slane %v4419_v1, 2 }
 0x12e   : > { %v7637_v57 = vpop.permute.xlu0 %1777 }
 0x12f   : > { %5721 = vmatmul.mubr.msk.bf16.vlgmr.msra.gmra.mrb[12].mxu1 %vm396_vm2, %v2932_v54  ;;  %v4422_v54 = vshll.u32 %v7546_v33, 16 }
 0x130   : > { %5724 = vmatprep.mubr.msk.bf16.mxu1 %vm396_vm2, %v2941_v18  ;;  %5733 = vmatpush3.bf16.msra.mxu1 %v6943_v24  ;;  %v4431_v18 = vshll.u32 %v7552_v27, 16 }
 0x131   : > { %v4424_v61 = vrot.slane %v4422_v54, 3 }
 0x132   : > { %5833 = vmatmul.mubr.msk.bf16.vlgmr.msra.gmra.mrb[12].mxu0 %vm396_vm2, %v4277_v53  ;;  %v4433_v16 = vrot.slane %v4431_v18, 3 }
 0x133   : > { %5845 = vmatpush3.bf16.msra.mxu0 %v6853_v60  ;;  %5836 = vmatprep.mubr.msk.bf16.mxu0 %vm396_vm2, %v4279_v3  ;;  %v4413_v60 = vshll.u32 %v7527_v41, 16  ;;  %v4430_v3 = vrot.slane %v4428_v30, 2  ;;  %v4425_v9 = vor.u32 %v4424_v61, %v4421_v12 }
 0x134   : > { %6245 = vmatprep.subr.msk.bf16.mxu0 %vm415_vm0, %v7492_v56  ;;  %v2968_v56 = vsel %vm1403_vm6, %v2958_v29, %v2967_v37  ;;  %v7629_v29 = vpop.permute.xlu1 %1772 }
 0x135   : > { %v4415_v28 = vrot.slane %v4413_v60, 3  ;;  %v4434_v22 = vor.u32 %v4433_v16, %v4430_v3  ;;  %v3091_v60 = vrot.slane %v7471_v58, 3 }
 0x137   : > { %5725 = vmatmul.mubr.msk.bf16.gmra.mrb[16].mxu1 %vm396_vm2, %v2950_v17  ;;  %v4416_v4 = vor.u32 %v4415_v28, %v4412_v38  ;;  %v4435_v26 = vsel %vm1403_vm6, %v4425_v9, %v4434_v22  ;;  %v7660_v38 = vpop.permute.xlu0 %4760  ;;  %v4448_v28 = vrot.slane %v4446_v52, 2  ;;  %v3094_v54 = vsel %vm1586_vm7, %v3091_v60, %v3093_v25 }
 0x138   : > { %5728 = vmatprep.mubr.msk.bf16.mxu1 %vm396_vm2, %v2959_v59  ;;  %v3090_v59 = vsel %vm1586_vm7, %v3087_v46, %v3089_v21  ;;  %v7650_v37 = vpop.permute.xlu1 %4755  ;;  %v4574_v46 = vld [vmem:[%s6607_s8 + $0x70] sm:$0x8]  ;;  %s6381_s8 = scalar_lea.vmem %s4935_s23, 16 }
 0x139   : > { %v4417_v53 = vsel %vm1403_vm6, %v4408_v63, %v4416_v4  ;;  %v4455_v63 = vshrl.u32 %v7655_v5, 16  ;;  %v5277_v16 = vcombine.low %v4574_v46, %v7512_v50  ;;  %v4579_v50 = vrot.slane %v7527_v41, 3  ;;  %v7716_v41 = vld [vmem:[%s7959_s3] ss:$0 sm:$0xff]  ;;  %p6382_p11 = scmp.ne.s32.totalorder %s4935_s23, %s6381_s8  ;;  %p6389_p1 = scmp.lt.s32.totalorder %s6387_s17, %s6381_s8 }
 0x13a   : > { %5837 = vmatmul.mubr.msk.bf16.gmra.mrb[16].mxu0 %vm396_vm2, %v4281_v31  ;;  %v4426_v31 = vsel %vm1403_vm6, %v4416_v4, %v4425_v9  ;;  %v4458_v4 = vshll.u32 %v7655_v5, 16 }
 0x13b   : > { %5840 = vmatprep.mubr.msk.bf16.mxu0 %vm396_vm2, %v4283_v62  ;;  %v4439_v62 = vrot.slane %v4437_v6, 2  ;;  %v4457_v61 = vrot.slane %v4455_v63, 2  ;;  %v4578_v52 = vrot.slane %v5277_v16, 3  ;;  %p6383_p12 = pnand %p6382_p11, %p6561_p5  ;;  %p6390_p2 = por %p6389_p1, %p6388_p0 }
 0x13c   : > { %v7675_v30 = vpop.permute.xlu1 %3271 }
 0x13d   : > { %v4443_v1 = vor.u32 %v4442_v43, %v4439_v62  ;;  %v4581_v43 = vrot.slane %v7546_v33, 3  ;;  %p6384_p13 = pneg %p6383_p12 }
 0x13f   : > { %5729 = vmatmul.mubr.msk.bf16.gmra.mrb[20].mxu1 %vm396_vm2, %v2968_v56  ;;  %v4451_v56 = vrot.slane %v4449_v7, 3  ;;  %v4444_v12 = vsel %vm1403_vm6, %v4434_v22, %v4443_v1  ;;  %v4582_v63 = vsel %vm1586_vm7, %v4579_v50, %v4581_v43  ;;  %p6391_p3 = pnand %p6390_p2, %p6384_p13 }
 0x140   : > { %5734 = vmatprep.mubr.msk.bf16.mxu1 %vm396_vm2, %v3086_v55  ;;  %v3092_v55 = vsel %vm1586_vm7, %v3089_v21, %v3091_v60  ;;  %v4460_v21 = vrot.slane %v4458_v4, 3  ;;  %v7694_v6 = vpop.permute.xlu1 %1782 }
 0x141   : > { %v4452_v18 = vor.u32 %v4451_v56, %v4448_v28 }
 0x142   : > { %v7626_v0 = vpop.f32.mrb[0].mxu1  ;;  %5841 = vmatmul.mubr.msk.bf16.gmra.mrb[20].mxu0 %vm396_vm2, %v4285_v14  ;;  %v7679_v14 = vpop.permute.xlu0 %3276  ;;  %v4461_v48 = vor.u32 %v4460_v21, %v4457_v61 }
 0x143   : > { %v7631_v17 = vpop.f32.mrb[1].mxu1  ;;  %5846 = vmatprep.mubr.msk.bf16.mxu0 %vm396_vm2, %v4417_v53  ;;  %v4453_v3 = vsel %vm1403_vm6, %v4443_v1, %v4452_v18 }
 0x144   : > { %v7634_v49 = vpop.f32.mrb[2].mxu1  ;;  %v4462_v7 = vsel %vm1403_vm6, %v4452_v18, %v4461_v48  ;;  %v7704_v60 = vpop.permute.xlu1 %4765 }
 0x145   : > { %v7639_v36 = vpop.f32.mrb[3].mxu1 }
 0x146   : > { %v7699_v22 = vpop.permute.xlu0 %1787 }
 0x147   : > { %5735 = vmatmul.mubr.msk.bf16.vlgmr.msra.gmra.mrb[12].mxu1 %vm396_vm2, %v3088_v44 }
 0x148   : > { %5738 = vmatprep.mubr.msk.bf16.mxu1 %vm396_vm2, %v3090_v59 }
 0x14a   : > { %v7657_v45 = vpop.f32.mrb[4].mxu1  ;;  %5847 = vmatmul.mubr.msk.bf16.vlgmr.msra.gmra.mrb[12].mxu0 %vm396_vm2, %v4426_v31  ;;  %v4580_v31 = vsel %vm1586_vm7, %v4578_v52, %v4579_v50  ;;  %v7708_v62 = vpop.permute.xlu0 %4770 }
 0x14b   : > { %v7662_v58 = vpop.f32.mrb[5].mxu1  ;;  %5859 = vmatpush3.bf16.msra.mxu0 %v6943_v24  ;;  %5850 = vmatprep.mubr.msk.bf16.mxu0 %vm396_vm2, %v4435_v26  ;;  %v3095_v24 = vrot.slane %v7561_v11, 3 }
 0x14c   : > { %v7665_v19 = vpop.f32.mrb[6].mxu1 }
 0x14d   : > { %v7669_v20 = vpop.f32.mrb[7].mxu1  ;;  %v3096_v59 = vsel %vm1586_vm7, %v3093_v25, %v3095_v24  ;;  %v4583_v25 = vrot.slane %v7552_v27, 3 }
 0x14e   : > { %v7724_v27 = vpop.permute.xlu0 %3286 }
 0x14f   : > { %5739 = vmatmul.mubr.msk.bf16.gmra.mrb[16].mxu1 %vm396_vm2, %v3092_v55  ;;  %v7719_v55 = vpop.permute.xlu1 %3281  ;;  %v4584_v18 = vsel %vm1586_vm7, %v4581_v43, %v4583_v25 }
 0x150   : > { %5742 = vmatprep.mubr.msk.bf16.mxu1 %vm396_vm2, %v3094_v54 }
 0x152   : > { %v7684_v53 = vpop.f32.mrb[8].mxu1  ;;  %5851 = vmatmul.mubr.msk.bf16.gmra.mrb[16].mxu0 %vm396_vm2, %v4444_v12  ;;  %v1798_v50 = vpop.permute.xlu0 %1797 }
 0x153   : > { %v7688_v44 = vpop.f32.mrb[9].mxu1  ;;  %5854 = vmatprep.mubr.msk.bf16.mxu0 %vm396_vm2, %v4453_v3  ;;  %v1793_v21 = vpop.permute.xlu1 %1792  ;;  %v4587_v3 = vrot.slane %v7579_v32, 3 }
 0x154   : > { %v7691_v9 = vpop.f32.mrb[10].mxu1 }
 0x155   : > { %v7696_v11 = vpop.f32.mrb[11].mxu1 }
 0x157   : > { %5743 = vmatmul.mubr.msk.bf16.gmra.mrb[20].mxu1 %vm396_vm2, %v3096_v59 }
 0x15a   : > { %5855 = vmatmul.mubr.msk.bf16.gmra.mrb[20].mxu0 %vm396_vm2, %v4462_v7 }
 0x15b   : > { %5860 = vmatprep.mubr.msk.bf16.mxu0 %vm396_vm2, %v4580_v31 }
 0x15d   : > { %v5610_v26 = vpop.f32.mrb[0].mxu0 }
 0x15e   : > { %v5931_v28 = vadd.f32 %v5610_v26, %v7626_v0  ;;  %v1655_v56 = vpop.f32.mrb[1].mxu0 }
 0x15f   : > { %v5932_v1 = vadd.f32 %v1655_v56, %v7631_v17  ;;  %v5611_v54 = vpop.f32.mrb[2].mxu0  ;;  %v4585_v17 = vrot.slane %v7576_v23, 3 }
 0x160   : > { %v5933_v33 = vadd.f32 %v5611_v54, %v7634_v49  ;;  %v1658_v4 = vpop.f32.mrb[3].mxu0  ;;  %v1716_v46 = vadd.f32 %v5931_v28, %v7716_v41 }
 0x161   : > { %v1714_v24 = vadd.f32 %v5932_v1, %v7716_v41  ;;  %v5934_v0 = vadd.f32 %v1658_v4, %v7639_v36  ;;  %v4586_v7 = vsel %vm1586_vm7, %v4583_v25, %v4585_v17  ;;  %v4588_v54 = vsel %vm1586_vm7, %v4585_v17, %v4587_v3 }
 0x162   : > { %5861 = vmatmul.mubr.msk.bf16.vlgmr.msra.gmra.mrb[12].mxu0 %vm396_vm2, %v4582_v63  ;;  %v1717_v61 = vadd.f32 %v5933_v33, %v7716_v41  ;;  %v1728_v16 = vmax.f32 %v1716_v46, 0.0 }
 0x163   : > { %v1726_v12 = vmax.f32 %v1714_v24, 0.0  ;;  %v1715_v49 = vadd.f32 %v5934_v0, %v7716_v41  ;;  %5864 = vmatprep.mubr.msk.bf16.mxu0 %vm396_vm2, %v4584_v18  ;;  %v7755_v24 = vpop.permute.xlu0 %4780 }
 0x164   : > { %v1729_v31 = vmax.f32 %v1717_v61, 0.0 }
 0x165   : > { %v1727_v59 = vmax.f32 %v1715_v49, 0.0  ;;  %v5614_v48 = vpop.f32.mrb[4].mxu0  ;;  %v1810_v23 = vmul.f32 %v7497_v15, %v1726_v12 }
 0x166   : > { %v5935_v52 = vadd.f32 %v5614_v48, %v7657_v45  ;;  %v1671_v36 = vpop.f32.mrb[5].mxu0  ;;  %v1812_v45 = vmul.f32 %v7538_v10, %v1728_v16 }
 0x167   : > { %v1811_v43 = vmul.f32 %v7518_v2, %v1727_v59  ;;  %v5936_v26 = vadd.f32 %v1671_v36, %v7662_v58  ;;  %v5615_v28 = vpop.f32.mrb[6].mxu0  ;;  %v7749_v2 = vpop.permute.xlu1 %4775  ;;  %v4589_v58 = vrot.slane %v7655_v5, 3 }
 0x168   : > { %v1720_v56 = vadd.f32 %v5935_v52, %v7716_v41  ;;  %v5937_v32 = vadd.f32 %v5615_v28, %v7665_v19  ;;  %v1674_v1 = vpop.f32.mrb[7].mxu0  ;;  %v1813_v19 = vmul.f32 %v7582_v8, %v1729_v31 }
 0x169   : > { %v1822_v63 = vadd.f32 %v1811_v43, %v1810_v23  ;;  %v1718_v25 = vadd.f32 %v5936_v26, %v7716_v41  ;;  %v5938_v15 = vadd.f32 %v1674_v1, %v7669_v20  ;;  %v4590_v52 = vsel %vm1586_vm7, %v4587_v3, %v4589_v58 }
 0x16a   : > { %v1721_v33 = vadd.f32 %v5937_v32, %v7716_v41  ;;  %5865 = vmatmul.mubr.msk.bf16.gmra.mrb[16].mxu0 %vm396_vm2, %v4586_v7  ;;  %v1732_v10 = vmax.f32 %v1720_v56, 0.0 }
 0x16b   : > { %v1823_v4 = vadd.f32 %v1822_v63, %v1812_v45  ;;  %v1730_v18 = vmax.f32 %v1718_v25, 0.0  ;;  %v1719_v46 = vadd.f32 %v5938_v15, %v7716_v41  ;;  %5868 = vmatprep.mubr.msk.bf16.mxu0 %vm396_vm2, %v4588_v54  ;;  %v7763_v7 = vpop.permute.xlu1 %3291 }
 0x16c   : > { %v1733_v61 = vmax.f32 %v1721_v33, 0.0  ;;  %v1816_v36 = vmul.f32 %v7694_v6, %v1732_v10  ;;  %v6478_v10 = vmov 0.0|0.0  }
 0x16d   : > { %v1814_v20 = vmul.f32 %v7629_v29, %v1730_v18  ;;  %v1824_v0 = vadd.f32 %v1823_v4, %v1813_v19  ;;  %v1731_v17 = vmax.f32 %v1719_v46, 0.0  ;;  %v5618_v12 = vpop.f32.mrb[8].mxu0  ;;  %v4828_v18 = vld [vmem:[%s7960_s4] sm:$0xff]  ;;  %5907 = vmatprep.subr.bf16.mxu1 %v6478_v10 }
 0x16e   : > { %v5939_v49 = vadd.f32 %v5618_v12, %v7684_v53  ;;  %v1687_v5 = vpop.f32.mrb[9].mxu0  ;;  %v4833_v12 = vld [vmem:[%s7960_s4 + $0x28] sm:$0xff] }
 0x16f   : > { %v1825_v16 = vadd.f32 %v1824_v0, %v1814_v20  ;;  %v1815_v8 = vmul.f32 %v7637_v57, %v1731_v17  ;;  %v5940_v59 = vadd.f32 %v1687_v5, %v7688_v44  ;;  %v5619_v48 = vpop.f32.mrb[10].mxu0  ;;  %v1817_v57 = vmul.f32 %v7699_v22, %v1733_v61  ;;  %v7770_v44 = vpop.permute.xlu0 %3296  ;;  %v4831_v20 = vld [vmem:[%s7960_s4 + $0x18] sm:$0xff]  ;;  %v4832_v17 = vld [vmem:[%s7960_s4 + $0x20] sm:$0xff] }
 0x170   : > { %v5941_v29 = vadd.f32 %v5619_v48, %v7691_v9  ;;  %v1690_v23 = vpop.f32.mrb[11].mxu0  ;;  %v1724_v43 = vadd.f32 %v5939_v49, %v7716_v41  ;;  %v1803_v45 = vpop.permute.xlu1 %1802  ;;  %v5914_v61 = vpack.c.bf16 %v4833_v12, %v4832_v17  ;;  %v4834_v49 = vld [vmem:[%s7960_s4 + $0x30] sm:$0xff]  ;;  %v4835_v5 = vld [vmem:[%s7960_s4 + $0x38] sm:$0xff] }
 0x171   : > { %v1826_v31 = vadd.f32 %v1825_v16, %v1815_v8  ;;  %v1722_v53 = vadd.f32 %v5940_v59, %v7716_v41  ;;  %v5942_v26 = vadd.f32 %v1690_v23, %v7696_v11  ;;  %v5917_v16 = vpack.c.bf16 %v4835_v5, %v4834_v49  ;;  %v4836_v8 = vld [vmem:[%s7960_s4 + $0x40] sm:$0xff]  ;;  %v4837_v59 = vld [vmem:[%s7960_s4 + $0x48] sm:$0xff] }
 0x172   : > { %5869 = vmatmul.mubr.msk.bf16.gmra.mrb[20].mxu0 %vm396_vm2, %v4590_v52  ;;  %v1725_v28 = vadd.f32 %v5941_v29, %v7716_v41  ;;  %v1736_v1 = vmax.f32 %v1724_v43, 0.0  ;;  %v5920_v48 = vpack.c.bf16 %v4837_v59, %v4836_v8  ;;  %v4838_v52 = vld [vmem:[%s7960_s4 + $0x50] sm:$0xff]  ;;  %v4840_v23 = vld [vmem:[%s7960_s4 + $0x60] sm:$0xff] }
 0x173   : > { %v1827_v3 = vadd.f32 %v1826_v31, %v1816_v36  ;;  %v1734_v6 = vmax.f32 %v1722_v53, 0.0  ;;  %v1723_v9 = vadd.f32 %v5942_v26, %v7716_v41  ;;  %v1808_v15 = vpop.permute.xlu0 %1807  ;;  %v4839_v36 = vld [vmem:[%s7960_s4 + $0x58] sm:$0xff]  ;;  %v4841_v31 = vld [vmem:[%s7960_s4 + $0x68] sm:$0xff]  ;;  %v4842_v53 = vld [vmem:[%s7960_s4 + $0x70] sm:$0xff] }
 0x174   : > { %v1737_v11 = vmax.f32 %v1725_v28, 0.0  ;;  %v1820_v22 = vmul.f32 %v1803_v45, %v1736_v1  ;;  %v5923_v29 = vpack.c.bf16 %v4839_v36, %v4838_v52  ;;  %v5926_v43 = vpack.c.bf16 %v4841_v31, %v4840_v23  ;;  %v4843_v26 = vld [vmem:[%s7960_s4 + $0x78] sm:$0xff] }
 0x175   : > { %v1818_v56 = vmul.f32 %v1793_v21, %v1734_v6  ;;  %v1735_v32 = vmax.f32 %v1723_v9, 0.0  ;;  %v1828_v54 = vadd.f32 %v1827_v3, %v1817_v57  ;;  %v4829_v21 = vld [vmem:[%s7960_s4 + $0x8] sm:$0xff]  ;;  %v5929_v57 = vpack.c.bf16 %v4843_v26, %v4842_v53 }
 0x176   : > { %v1821_v19 = vmul.f32 %v1808_v15, %v1737_v11  ;;  %v5908_v46 = vpack.c.bf16 %v4829_v21, %v4828_v18  ;;  %v6480_v3 = vmov 0.0  }
 0x177   : > { %v1819_v63 = vmul.f32 %v1798_v50, %v1735_v32  ;;  %v1829_v25 = vadd.f32 %v1828_v54, %v1818_v56  ;;  %v4830_v50 = vld [vmem:[%s7960_s4 + $0x10] sm:$0xff]  ;;  %5904 = vmatprep.mubr.msk.f32.mxu1 %vm6479_vm8, %v6480_v3 }
 0x178   : > { %5909 = vmatpush3.bf16.msra.mxu1 %v5908_v46  ;;  %v5911_v0 = vpack.c.bf16 %v4831_v20, %v4830_v50 }
 0x179   : > { %v1830_v33 = vadd.f32 %v1829_v25, %v1819_v63  ;;  %5910 = vmatprep.subr.bf16.mxu1 %v6478_v10 }
 0x17b   : > { %v1831_v58 = vadd.f32 %v1830_v33, %v1820_v22 }
 0x17c   : > { %5912 = vmatpush3.bf16.msra.mxu1 %v5911_v0 }
 0x17d   : > { %v7775_v4 = vadd.f32 %v1831_v58, %v1821_v19  ;;  %5913 = vmatprep.subr.bf16.mxu1 %v6478_v10 }
 0x180   : > { %5915 = vmatpush3.bf16.msra.mxu1 %v5914_v61 }
 0x181   : > { %5916 = vmatprep.subr.bf16.mxu1 %v6478_v10 }
 0x184   : > { %5918 = vmatpush3.bf16.msra.mxu1 %v5917_v16 }
 0x185   : > { %5919 = vmatprep.subr.bf16.mxu1 %v6478_v10 }
 0x188   : > { %5921 = vmatpush3.bf16.msra.mxu1 %v5920_v48 }
 0x189   : > { %5922 = vmatprep.subr.bf16.mxu1 %v6478_v10 }
 0x18c   : > { %5924 = vmatpush3.bf16.msra.mxu1 %v5923_v29 }
 0x18d   : > { %5925 = vmatprep.subr.bf16.mxu1 %v6478_v10 }
 0x190   : > { %5927 = vmatpush3.bf16.msra.mxu1 %v5926_v43 }
 0x191   : > { %5928 = vmatprep.subr.bf16.mxu1 %v6478_v10 }
 0x194   : > { %5930 = vmatpush3.bf16.msra.mxu1 %v5929_v57 }
 0x21a   : > { %v5736_v6 = vpop.f32.mrb[12].mxu1 }
 0x21b   : > { %v3149_v28 = vpop.f32.mrb[13].mxu1  ;;  %v3210_v9 = vadd.f32 %v5736_v6, %v7716_v41  ;;  %v7846_v6 = vpop.permute.xlu1 %4785 }
 0x21c   : > { %v3208_v56 = vadd.f32 %v7716_v41, %v3149_v28  ;;  %v5737_v32 = vpop.f32.mrb[14].mxu1 }
 0x21d   : > { %v3152_v1 = vpop.f32.mrb[15].mxu1  ;;  %v3211_v45 = vadd.f32 %v5737_v32, %v7716_v41  ;;  %v3222_v25 = vmax.f32 %v3210_v9, 0.0 }
 0x21e   : > { %v3220_v54 = vmax.f32 %v3208_v56, 0.0  ;;  %v3209_v63 = vadd.f32 %v7716_v41, %v3152_v1 }
 0x21f   : > { %v3223_v22 = vmax.f32 %v3211_v45, 0.0  ;;  %v3306_v18 = vmul.f32 %v7571_v13, %v3222_v25  ;;  %v3302_v25 = vpop.permute.xlu1 %3301 }
 0x220   : > { %v3221_v11 = vmax.f32 %v3209_v63, 0.0  ;;  %v3304_v15 = vmul.f32 %v7531_v42, %v3220_v54 }
 0x221   : > { %v3307_v17 = vmul.f32 %v7611_v51, %v3223_v22 }
 0x222   : > { %v3305_v33 = vmul.f32 %v7554_v40, %v3221_v11  ;;  %v5740_v58 = vpop.f32.mrb[16].mxu1 }
 0x223   : > { %v3165_v19 = vpop.f32.mrb[17].mxu1  ;;  %v3214_v46 = vadd.f32 %v5740_v58, %v7716_v41 }
 0x224   : > { %v3316_v21 = vadd.f32 %v3305_v33, %v3304_v15  ;;  %v3212_v10 = vadd.f32 %v7716_v41, %v3165_v19  ;;  %v5741_v50 = vpop.f32.mrb[18].mxu1 }
 0x225   : > { %v3215_v20 = vadd.f32 %v5741_v50, %v7716_v41  ;;  %v3168_v0 = vpop.f32.mrb[19].mxu1  ;;  %v3226_v40 = vmax.f32 %v3214_v46, 0.0 }
 0x226   : > { %v3317_v12 = vadd.f32 %v3316_v21, %v3306_v18  ;;  %v3224_v42 = vmax.f32 %v3212_v10, 0.0  ;;  %v3213_v61 = vadd.f32 %v7716_v41, %v3168_v0 }
 0x227   : > { %v3227_v16 = vmax.f32 %v3215_v20, 0.0  ;;  %v3310_v36 = vmul.f32 %v7679_v14, %v3226_v40 }
 0x228   : > { %v3308_v49 = vmul.f32 %v7617_v39, %v3224_v42  ;;  %v3318_v5 = vadd.f32 %v3317_v12, %v3307_v17  ;;  %v3225_v13 = vmax.f32 %v3213_v61, 0.0 }
 0x229   : > { %v3311_v43 = vmul.f32 %v7719_v55, %v3227_v16 }
 0x22a   : > { %v3319_v8 = vadd.f32 %v3318_v5, %v3308_v49  ;;  %v3309_v59 = vmul.f32 %v7675_v30, %v3225_v13  ;;  %v5744_v48 = vpop.f32.mrb[20].mxu1  ;;  %v1833_v30 = vrot.slane %v7775_v4, 4 }
 0x22b   : > { %v3181_v52 = vpop.f32.mrb[21].mxu1  ;;  %v3218_v51 = vadd.f32 %v5744_v48, %v7716_v41 }
 0x22c   : > { %v3320_v29 = vadd.f32 %v3319_v8, %v3309_v59  ;;  %v3216_v23 = vadd.f32 %v7716_v41, %v3181_v52  ;;  %v5745_v31 = vpop.f32.mrb[22].mxu1  ;;  %v1834_v54 = vadd.f32 %v1833_v30, %v7775_v4 }
 0x22d   : > { %v3184_v53 = vpop.f32.mrb[23].mxu1  ;;  %v3219_v57 = vadd.f32 %v5745_v31, %v7716_v41  ;;  %v3230_v14 = vmax.f32 %v3218_v51, 0.0 }
 0x22e   : > { %v3321_v39 = vadd.f32 %v3320_v29, %v3310_v36  ;;  %v3228_v26 = vmax.f32 %v3216_v23, 0.0  ;;  %v3217_v3 = vadd.f32 %v7716_v41, %v3184_v53  ;;  %v1835_v33 = vrot.slane %v1834_v54, 2 }
 0x22f   : > { %v3231_v1 = vmax.f32 %v3219_v57, 0.0  ;;  %v3314_v45 = vmul.f32 %v7770_v44, %v3230_v14 }
 0x230   : > { %v3312_v28 = vmul.f32 %v7724_v27, %v3228_v26  ;;  %v3322_v9 = vadd.f32 %v3321_v39, %v3311_v43  ;;  %v3229_v56 = vmax.f32 %v3217_v3, 0.0  ;;  %v1836_v50 = vadd.f32 %v1835_v33, %v1834_v54 }
 0x231   : > { %v3315_v11 = vmul.f32 %v3302_v25, %v3231_v1 }
 0x232   : > { %v3323_v32 = vadd.f32 %v3322_v9, %v3312_v28  ;;  %v3313_v55 = vmul.f32 %v7763_v7, %v3229_v56  ;;  %v1837_v5 = vrot.slane %v1836_v50, 1 }
 0x234   : > { %v3324_v63 = vadd.f32 %v3323_v32, %v3313_v55  ;;  %v1838_v53 = vadd.f32 %v1837_v5, %v1836_v50 }
 0x235   : > { %v5862_v22 = vpop.f32.mrb[12].mxu0 }
 0x236   : > { %v3325_v15 = vadd.f32 %v3324_v63, %v3314_v45  ;;  %v4643_v19 = vpop.f32.mrb[13].mxu0  ;;  %v4704_v27 = vadd.f32 %v5862_v22, %v7716_v41 }
 0x237   : > { %v4702_v18 = vadd.f32 %v7716_v41, %v4643_v19  ;;  %v5863_v21 = vpop.f32.mrb[14].mxu0 }
 0x238   : > { %v3326_v58 = vadd.f32 %v3325_v15, %v3315_v11  ;;  %v4646_v10 = vpop.f32.mrb[15].mxu0  ;;  %v4705_v4 = vadd.f32 %v5863_v21, %v7716_v41  ;;  %v4716_v0 = vmax.f32 %v4704_v27, 0.0  ;;  %v4791_v21 = vpop.permute.xlu0 %4790 }
 0x239   : > { %v4714_v7 = vmax.f32 %v4702_v18, 0.0  ;;  %v4703_v44 = vadd.f32 %v7716_v41, %v4646_v10  ;;  %v4796_v10 = vpop.permute.xlu1 %4795 }
 0x23a   : > { %v3327_v46 = vrot.slane %v3326_v58, 4  ;;  %v4717_v61 = vmax.f32 %v4705_v4, 0.0  ;;  %v4800_v8 = vmul.f32 %v7603_v34, %v4716_v0 }
 0x23b   : > { %v4715_v17 = vmax.f32 %v4703_v44, 0.0  ;;  %v4798_v42 = vmul.f32 %v7558_v47, %v4714_v7 }
 0x23c   : > { %v3328_v20 = vadd.f32 %v3327_v46, %v3326_v58  ;;  %v4801_v47 = vmul.f32 %v7650_v37, %v4717_v61 }
 0x23d   : > { %v4799_v40 = vmul.f32 %v7593_v35, %v4715_v17  ;;  %v5866_v49 = vpop.f32.mrb[16].mxu0 }
 0x23e   : > { %v3329_v12 = vrot.slane %v3328_v20, 2  ;;  %v4659_v16 = vpop.f32.mrb[17].mxu0  ;;  %v4708_v48 = vadd.f32 %v5866_v49, %v7716_v41 }
 0x23f   : > { %v4810_v59 = vadd.f32 %v4799_v40, %v4798_v42  ;;  %v4706_v52 = vadd.f32 %v7716_v41, %v4659_v16  ;;  %v5867_v36 = vpop.f32.mrb[18].mxu0 }
 0x240   : > { %v3330_v13 = vadd.f32 %v3329_v12, %v3328_v20  ;;  %v4709_v51 = vadd.f32 %v5867_v36, %v7716_v41  ;;  %v4662_v23 = vpop.f32.mrb[19].mxu0  ;;  %v4720_v26 = vmax.f32 %v4708_v48, 0.0 }
 0x241   : > { %v4811_v31 = vadd.f32 %v4810_v59, %v4800_v8  ;;  %v4718_v35 = vmax.f32 %v4706_v52, 0.0  ;;  %v4707_v43 = vadd.f32 %v7716_v41, %v4662_v23 }
 0x242   : > { %v3331_v29 = vrot.slane %v3330_v13, 1  ;;  %v4721_v30 = vmax.f32 %v4709_v51, 0.0  ;;  %v4804_v37 = vmul.f32 %v7708_v62, %v4720_v26 }
 0x243   : > { %v4802_v34 = vmul.f32 %v7660_v38, %v4718_v35  ;;  %v4812_v57 = vadd.f32 %v4811_v31, %v4801_v47  ;;  %v4719_v3 = vmax.f32 %v4707_v43, 0.0 }
 0x244   : > { %v3332_v39 = vadd.f32 %v3331_v29, %v3330_v13  ;;  %v4805_v63 = vmul.f32 %v7749_v2, %v4721_v30 }
 0x245   : > { %v4813_v28 = vadd.f32 %v4812_v57, %v4802_v34  ;;  %v4803_v9 = vmul.f32 %v7704_v60, %v4719_v3  ;;  %v5870_v56 = vpop.f32.mrb[20].mxu0 }
 0x246   : > { %v3333_v14 = vadd.f32 %v3332_v39, %v1838_v53  ;;  %v4675_v32 = vpop.f32.mrb[21].mxu0  ;;  %v4712_v55 = vadd.f32 %v5870_v56, %v7716_v41 }
 0x247   : > { %v4814_v1 = vadd.f32 %v4813_v28, %v4803_v9  ;;  %v4710_v54 = vadd.f32 %v7716_v41, %v4675_v32  ;;  %v5871_v45 = vpop.f32.mrb[22].mxu0 }
 0x248   : > { %v4678_v38 = vpop.f32.mrb[23].mxu0  ;;  %v4713_v15 = vadd.f32 %v5871_v45, %v7716_v41  ;;  %v4724_v60 = vmax.f32 %v4712_v55, 0.0 }
 0x249   : > { %v4815_v25 = vadd.f32 %v4814_v1, %v4804_v37  ;;  %v4722_v11 = vmax.f32 %v4710_v54, 0.0  ;;  %v4711_v22 = vadd.f32 %v7716_v41, %v4678_v38 }
 0x24a   : > { %v4725_v27 = vmax.f32 %v4713_v15, 0.0  ;;  %v4808_v46 = vmul.f32 %v4791_v21, %v4724_v60 }
 0x24b   : > { %v4806_v33 = vmul.f32 %v7755_v24, %v4722_v11  ;;  %v4816_v58 = vadd.f32 %v4815_v25, %v4805_v63  ;;  %v4723_v62 = vmax.f32 %v4711_v22, 0.0 }
 0x24c   : > { %v4809_v7 = vmul.f32 %v4796_v10, %v4725_v27 }
 0x24d   : > { %v4817_v19 = vadd.f32 %v4816_v58, %v4806_v33  ;;  %v4807_v18 = vmul.f32 %v7846_v6, %v4723_v62 }
 0x24f   : > { %v4818_v2 = vadd.f32 %v4817_v19, %v4807_v18 }
 0x251   : > { %v4819_v4 = vadd.f32 %v4818_v2, %v4808_v46 }
 0x253   : > { %v4820_v44 = vadd.f32 %v4819_v4, %v4809_v7 }
 0x255   : > { %v4821_v41 = vrot.slane %v4820_v44, 4 }
 0x257   : > { %v4822_v50 = vadd.f32 %v4821_v41, %v4820_v44 }
 0x259   : > { %v4823_v20 = vrot.slane %v4822_v50, 2 }
 0x25b   : > { %v4824_v24 = vadd.f32 %v4823_v20, %v4822_v50 }
 0x25d   : > { %v4825_v0 = vrot.slane %v4824_v24, 1 }
 0x25f   : > { %v4826_v6 = vadd.f32 %v4825_v0, %v4824_v24 }
 0x261   : > { %v4827_v17 = vadd.f32 %v4826_v6, %v3333_v14 }
 0x263   : > { %5905 = vmatmul.mubr.f32.vlgmr.msra.gmra.mrb[24].mxu1 %v4827_v17  ;;  %4915 = vst [vmem:[%s274_s21] sm:$0x1] %v4827_v17 }
 0x264   : > { %6394 = shalt.err (!%p6391_p3)
}
 0x265   : > { %s6395_s18 = scalar_lea.hbm %s7884_s13, 16  ;;  %s6399_s29 = scalar_lea.hbm %s7962_s6, 32 }
 0x266   : > { %p6396_p4 = scmp.ne.s32.totalorder %s7884_s13, %s6395_s18  ;;  %p6400_p9 = scmp.lt.u32.totalorder %s7884_s13, %s7962_s6 }
 0x267   : > { %p6401_p10 = scmp.lt.u32.totalorder %s6399_s29, %s6395_s18  ;;  %p6403_p12 = scmp.lt.u32.totalorder %s6395_s18, %s7884_s13 }
 0x268   : > { %p6397_p7 = pnand %p6396_p4, %p6561_p5 }
 0x269   : > { %p6402_p11 = por %p6401_p10, %p6400_p9 }
 0x26a   : > { %p6398_p8 = pneg %p6397_p7 }
 0x26b   : > { %p6404_p13 = por %p6403_p12, %p6402_p11 }
 0x26d   : > { %p6405_p0 = pnand %p6404_p13, %p6398_p8 }
 0x26f   : > { %6408 = shalt.err (!%p6405_p0)
}
 0x270   : > { %6247 = dma.vmem_to_hbm [thread:$0]  (%p6561_p5), %s4935_s23, 16, %s7884_s13, %s4918_s14   ;;  %v4844_v12 = vld [vmem:[%s7961_s5] sm:$0x1] }
 0x271   : > { %s280_s17 = scalar_lea.vmem [#allocation4], %s7875_s20  ;;  %s7913_s29 = scalar_lea.hbm %s7963_s7, %s5284_s22 }
 0x272   : > { %s4947_s19 = sshll.u32 %s280_s17, 4  ;;  %s4922_s23 = scalar_lea.sflag [#allocation5], %s7875_s20  ;;  %s7915_s19 = int_to_ptr.vmem [resolvable:$true] %s4947_s19 }
 0x273   : > { %s6409_s13 = scalar_lea.vmem %s7915_s19, 16  ;;  %s6482_s14 = smov [#allocation4]  }
 0x274   : > { %p6410_p1 = scmp.ne.s32.totalorder %s7915_s19, %s6409_s13  ;;  %s6413_s9 = sshll.u32 %s6482_s14, 4  ;;  %s6414_s9 = int_to_ptr.vmem [resolvable:$false] %s6413_s9 }
 0x275   : > { %s6415_s28 = scalar_lea.vmem %s6414_s9, 32  ;;  %p6416_p4 = scmp.lt.s32.totalorder %s7915_s19, %s6414_s9 }
 0x276   : > { %p6411_p2 = pnand %p6410_p1, %p6561_p5  ;;  %p6417_p7 = scmp.lt.s32.totalorder %s6415_s28, %s6409_s13 }
 0x278   : > { %p6412_p3 = pneg %p6411_p2  ;;  %p6418_p8 = por %p6417_p7, %p6416_p4 }
 0x27a   : > { %p6419_p9 = pnand %p6418_p8, %p6412_p3 }
 0x336   : > { %v4911_v42 = vpop.f32.mrb[24].mxu1 }
 0x337   : > { %v4912_v61 = vadd.f32 %v4911_v42, %v4844_v12  ;;  %v5906_v40 = vpop.f32.mrb[25].mxu1 }
 0x339   : > { %4916 = vst [vmem:[%s280_s17] sm:$0x1] %v4912_v61 }
 0x33a   : > { %6422 = shalt.err (!%p6419_p9)
}
 0x33b   : > { %s6423_s20 = scalar_lea.hbm %s7913_s29, 16  ;;  %s6427_s8 = scalar_lea.hbm %s7963_s7, 32 }
 0x33c   : > { %p6424_p10 = scmp.ne.s32.totalorder %s7913_s29, %s6423_s20  ;;  %p6428_p13 = scmp.lt.u32.totalorder %s7913_s29, %s7963_s7 }
 0x33d   : > { %p6429_p0 = scmp.lt.u32.totalorder %s6427_s8, %s6423_s20  ;;  %p6431_p2 = scmp.lt.u32.totalorder %s6423_s20, %s7913_s29 }
 0x33e   : > { %p6425_p11 = pnand %p6424_p10, %p6561_p5 }
 0x33f   : > { %p6430_p1 = por %p6429_p0, %p6428_p13 }
 0x340   : > { %p6426_p12 = pneg %p6425_p11 }
 0x341   : > { %p6432_p3 = por %p6431_p2, %p6430_p1 }
 0x343   : > { %p6433_p4 = pnand %p6432_p3, %p6426_p12 }
 0x345   : > { %6436 = shalt.err (!%p6433_p4)
}
 0x346   : > { %6248 = dma.vmem_to_hbm [thread:$0]  (%p6561_p5), %s7915_s19, 16, %s7913_s29, %s4922_s23  }
 0x347 PF: > { %p6258_p7 = scmp.ge.s32.totalorder %s6475_s27, 2  ;;  %s4959_s18 = sand.u32 1, %s6463_s24  }
 0x348   : > { %s4960_s21 = scalar_lea.sflag [#allocation3], %s4959_s18 }
 0x349   : > { %p6252_p8 = pnand %p6258_p7, %p6565_p6 }
 0x34b   : > { %6454 = dma.done.wait (!%p6252_p8), %s4960_s21, 16  }
 0x34c   : > { %6456 = vsyncadd (!%p6252_p8), %s4960_s21, 4294967280  ;;  %s4968_s13 = scalar_lea.sflag [#allocation5], %s4959_s18 }
 0x34d   : > { %6458 = dma.done.wait (!%p6252_p8), %s4968_s13, 16  }
 0x34e   : > { %6460 = vsyncadd (!%p6252_p8), %s4968_s13, 4294967280  ;;  %p21_p5 = scmp.ge.s32.totalorder %s6548_s30, 4   ;;  %s7966_s24 = smov %s6467_s25 }
 0x34f   : > { %s7967_s25 = smov %s6471_s26  ;;  %s7968_s26 = smov %s6559_s10 }
 0x350   : > { %s7969_s27 = smov %s6548_s30  ;;  %23 = sbr.rel (!%p21_p5) target bundleno = 5 (0x5), region = 104 }
 0x357   :  { %4972 = vsyncpa [#allocation3], 1 }
 0x358   :  { %4974 = vsyncpa [#allocation3 + $0x1], 1 }
 0x359   :  { %4975 = vsyncpa [#allocation5], 1 }
 0x35a   :  { %4977 = vsyncpa [#allocation5 + $0x1], 1 }

</bundles_post_ra>
